<compile_context>
chip_gen: v7x
topology: tpu7x:2x2x1
jax: 0.10.0
libtpu: 0.0.40
codegen_flags: <defaults>
</compile_context>

<pallas_src>
import functools

import jax
import jax.numpy as jnp
from jax.experimental import pallas as pl
from jax.experimental.pallas import tpu as pltpu

# ----- synthetic CFG (DistilBERT-like, small) -----
VOCAB = 100
MAX_POS = 32
DIM = 64              # CFG.text_embedding  (config.dim)
N_HEADS = 4
HEAD_DIM = DIM // N_HEADS
HIDDEN_DIM = DIM * 4  # config.hidden_dim = text_embedding * 4
N_LAYERS = 2
TEXT_HIDDEN = 128     # CFG.text_hidden_size
TEXT_EXPAND = 96      # CFG.text_expand_embedding
LN_EPS = 1e-12
NEG_INF = -1e30


# ---------------------------------------------------------------------------
# Fused encoder kernel: everything after the embedding gather.
# ---------------------------------------------------------------------------
def _encoder_kernel(h0_ref, bias_ref,
                    emb_g_ref, emb_b_ref,
                    qkv_w_ref, qkv_b_ref,
                    o_w_ref, o_b_ref,
                    sa_g_ref, sa_b_ref,
                    f1_w_ref, f1_b_ref,
                    f2_w_ref, f2_b_ref,
                    out_g_ref, out_b_ref,
                    h1_w_ref, h1_b_ref,
                    h2_w_ref, h2_b_ref,
                    o_ref, *, batch, seq):
    scale = 1.0 / float(HEAD_DIM) ** 0.5

    def layernorm(x, g, b):
        mu = jnp.mean(x, axis=-1, keepdims=True)
        var = jnp.mean((x - mu) ** 2, axis=-1, keepdims=True)
        return (x - mu) * jax.lax.rsqrt(var + LN_EPS) * g + b

    # Additive attention bias (B*S, B*S): 0 keep / -1e30 masked. Loaded once,
    # shared by every layer and head.
    attn_bias = bias_ref[...]

    # DistilBERT embeddings LayerNorm (no fake zero residual).
    h = layernorm(h0_ref[...], emb_g_ref[...], emb_b_ref[...])

    for l in range(N_LAYERS):                       # static unroll (N_LAYERS=2)
        # --- multi-head self-attention: single fused QKV matmul -------------
        qkv = (jnp.dot(h, qkv_w_ref[l], preferred_element_type=jnp.float32)
               + qkv_b_ref[l])                       # (B*S, 3D)
        q = qkv[:, :DIM] * scale                     # fold 1/sqrt(dh) into Q once
        k = qkv[:, DIM:2 * DIM]
        v = qkv[:, 2 * DIM:]

        # Heads as a static unrolled loop over lane slices; all (batch, head)
        # pairs share the block-diagonal bias, so the math stays 2-D and fully
        # VMEM resident (no per-head grid steps, no reshapes/transposes of h).
        ctx_heads = []
        for hh in range(N_HEADS):
            sl = slice(hh * HEAD_DIM, (hh + 1) * HEAD_DIM)
            s = jnp.dot(q[:, sl], k[:, sl].T,
                        preferred_element_type=jnp.float32)     # (B*S, B*S)
            s = s + attn_bias
            s = s - jnp.max(s, axis=-1, keepdims=True)
            p = jnp.exp(s)
            p = p * pl.reciprocal(jnp.sum(p, axis=-1, keepdims=True), approx=True)
            ctx_heads.append(jnp.dot(p, v[:, sl],
                                     preferred_element_type=jnp.float32))
        ctx = jnp.concatenate(ctx_heads, axis=-1)    # (B*S, D)

        attn_out = (jnp.dot(ctx, o_w_ref[l], preferred_element_type=jnp.float32)
                    + o_b_ref[l])
        h = layernorm(attn_out + h, sa_g_ref[l], sa_b_ref[l])

        # --- FFN: Linear -> GELU -> Linear, residual + LayerNorm -------------
        ff = (jnp.dot(h, f1_w_ref[l], preferred_element_type=jnp.float32)
              + f1_b_ref[l])
        # TODO(synk): DistilBERT uses exact erf-GELU; tanh approximation used here.
        ff = jax.nn.gelu(ff, approximate=True)
        ff = (jnp.dot(ff, f2_w_ref[l], preferred_element_type=jnp.float32)
              + f2_b_ref[l])
        h = layernorm(ff + h, out_g_ref[l], out_b_ref[l])

    # --- CLS rows (target_token_idx = 0) + fused heads MLP -------------------
    cls = jnp.concatenate([h[b * seq:b * seq + 1, :] for b in range(batch)],
                          axis=0)                    # (B, D)
    hd = (jnp.dot(cls, h1_w_ref[...], preferred_element_type=jnp.float32)
          + h1_b_ref[...])
    hd = jnp.maximum(hd, 0.0)                        # Linear -> ReLU
    o_ref[...] = (jnp.dot(hd, h2_w_ref[...], preferred_element_type=jnp.float32)
                  + h2_b_ref[...])                   # -> Linear


# ---------------------------------------------------------------------------
# Parameter initialization (deterministic, synthetic — no checkpoint loading)
# ---------------------------------------------------------------------------
def _xavier_uniform(key, out_f, in_f):
    limit = (6.0 / (in_f + out_f)) ** 0.5
    w = jax.random.uniform(key, (out_f, in_f), jnp.float32, -limit, limit)
    return w.T  # stored as (in, out) for the kernels (x @ W^T in torch terms)


def init_params(key):
    keys = iter(jax.random.split(key, 2 + N_LAYERS * 6 + 2))
    p = {
        "word_emb": 0.02 * jax.random.normal(next(keys), (VOCAB, DIM), jnp.float32),
        "pos_emb": 0.02 * jax.random.normal(next(keys), (MAX_POS, DIM), jnp.float32),
        "emb_ln_g": jnp.ones((1, DIM), jnp.float32),
        "emb_ln_b": jnp.zeros((1, DIM), jnp.float32),
    }
    qkv_w, o_w, f1_w, f2_w = [], [], [], []
    for _ in range(N_LAYERS):
        qw = _xavier_uniform(next(keys), DIM, DIM)
        kw = _xavier_uniform(next(keys), DIM, DIM)
        vw = _xavier_uniform(next(keys), DIM, DIM)
        qkv_w.append(jnp.concatenate([qw, kw, vw], axis=1))   # (D, 3D) fused QKV
        o_w.append(_xavier_uniform(next(keys), DIM, DIM))
        f1_w.append(_xavier_uniform(next(keys), HIDDEN_DIM, DIM))
        f2_w.append(_xavier_uniform(next(keys), DIM, HIDDEN_DIM))
    p["qkv_w"] = jnp.stack(qkv_w)                              # (L, D, 3D)
    p["qkv_b"] = jnp.zeros((N_LAYERS, 1, 3 * DIM), jnp.float32)
    p["o_w"] = jnp.stack(o_w)                                  # (L, D, D)
    p["o_b"] = jnp.zeros((N_LAYERS, 1, DIM), jnp.float32)
    p["sa_ln_g"] = jnp.ones((N_LAYERS, 1, DIM), jnp.float32)
    p["sa_ln_b"] = jnp.zeros((N_LAYERS, 1, DIM), jnp.float32)
    p["f1_w"] = jnp.stack(f1_w)                                # (L, D, HIDDEN)
    p["f1_b"] = jnp.zeros((N_LAYERS, 1, HIDDEN_DIM), jnp.float32)
    p["f2_w"] = jnp.stack(f2_w)                                # (L, HIDDEN, D)
    p["f2_b"] = jnp.zeros((N_LAYERS, 1, DIM), jnp.float32)
    p["out_ln_g"] = jnp.ones((N_LAYERS, 1, DIM), jnp.float32)
    p["out_ln_b"] = jnp.zeros((N_LAYERS, 1, DIM), jnp.float32)
    # self.heads: Linear(DIM, TEXT_HIDDEN) -> ReLU -> Linear(TEXT_HIDDEN, TEXT_EXPAND)
    p["h1_w"] = _xavier_uniform(next(keys), TEXT_HIDDEN, DIM)
    p["h1_b"] = jnp.zeros((1, TEXT_HIDDEN), jnp.float32)
    p["h2_w"] = _xavier_uniform(next(keys), TEXT_EXPAND, TEXT_HIDDEN)
    p["h2_b"] = jnp.zeros((1, TEXT_EXPAND), jnp.float32)
    return p


# ---------------------------------------------------------------------------
# Forward pass  ==  TextEncoder_AddFC.forward(input_ids, attention_mask)
# ---------------------------------------------------------------------------
def text_encoder_addfc_forward(params, input_ids, attention_mask):
    B, S = input_ids.shape

    # Embedding gather (word + position) stays in plain JAX; everything else is
    # one fused Pallas kernel with activations resident in VMEM.
    pos_ids = jnp.arange(S)
    h0 = (params["word_emb"][input_ids]
          + params["pos_emb"][pos_ids][None, :, :]).reshape(B * S, DIM)

    # Additive attention bias (B*S, B*S): 0 where query/key belong to the same
    # batch element AND the key is not padding; -1e30 otherwise. This lets the
    # kernel keep attention purely 2-D (no reshapes / transposes / head grid).
    row_batch = jnp.arange(B * S) // S
    same_batch = row_batch[:, None] == row_batch[None, :]
    key_keep = (attention_mask.reshape(B * S) > 0)[None, :]
    attn_bias = jnp.where(same_batch & key_keep, 0.0, NEG_INF).astype(jnp.float32)

    kernel = functools.partial(_encoder_kernel, batch=B, seq=S)
    return pl.pallas_call(
        kernel,
        out_shape=jax.ShapeDtypeStruct((B, TEXT_EXPAND), jnp.float32),
        compiler_params=pltpu.CompilerParams(vmem_limit_bytes=32 * 1024 * 1024),
    )(h0, attn_bias,
      params["emb_ln_g"], params["emb_ln_b"],
      params["qkv_w"], params["qkv_b"],
      params["o_w"], params["o_b"],
      params["sa_ln_g"], params["sa_ln_b"],
      params["f1_w"], params["f1_b"],
      params["f2_w"], params["f2_b"],
      params["out_ln_g"], params["out_ln_b"],
      params["h1_w"], params["h1_b"],
      params["h2_w"], params["h2_b"])


if __name__ == "__main__":
    key = jax.random.PRNGKey(0)
    k_param, k_ids = jax.random.split(key)

    params = init_params(k_param)

    B, S = 2, 8
    input_ids = jax.random.randint(k_ids, (B, S), 0, VOCAB, dtype=jnp.int32)
    attention_mask = jnp.array(
        [[1, 1, 1, 1, 1, 1, 1, 1],
         [1, 1, 1, 1, 1, 0, 0, 0]], dtype=jnp.int32)  # pad some tokens in batch 1

    fwd = jax.jit(functools.partial(text_encoder_addfc_forward, params))
    out = fwd(input_ids, attention_mask)
    jax.block_until_ready(out)

    assert out.shape == (B, TEXT_EXPAND) and out.dtype == jnp.float32
    assert bool(jnp.all(jnp.isfinite(out)))
    print("KERNEL_OK")
</pallas_src>

<mosaic_0001>
module attributes {stable_mosaic.version = 11 : i64} {
  func.func @_encoder_kernel(%arg0: memref<16x64xf32, #tpu.memory_space<vmem>>, %arg1: memref<16x16xf32, #tpu.memory_space<vmem>>, %arg2: memref<1x64xf32, #tpu.memory_space<vmem>>, %arg3: memref<1x64xf32, #tpu.memory_space<vmem>>, %arg4: memref<2x64x192xf32, #tpu.memory_space<vmem>>, %arg5: memref<2x1x192xf32, #tpu.memory_space<vmem>>, %arg6: memref<2x64x64xf32, #tpu.memory_space<vmem>>, %arg7: memref<2x1x64xf32, #tpu.memory_space<vmem>>, %arg8: memref<2x1x64xf32, #tpu.memory_space<vmem>>, %arg9: memref<2x1x64xf32, #tpu.memory_space<vmem>>, %arg10: memref<2x64x256xf32, #tpu.memory_space<vmem>>, %arg11: memref<2x1x256xf32, #tpu.memory_space<vmem>>, %arg12: memref<2x256x64xf32, #tpu.memory_space<vmem>>, %arg13: memref<2x1x64xf32, #tpu.memory_space<vmem>>, %arg14: memref<2x1x64xf32, #tpu.memory_space<vmem>>, %arg15: memref<2x1x64xf32, #tpu.memory_space<vmem>>, %arg16: memref<64x128xf32, #tpu.memory_space<vmem>>, %arg17: memref<1x128xf32, #tpu.memory_space<vmem>>, %arg18: memref<128x96xf32, #tpu.memory_space<vmem>>, %arg19: memref<1x96xf32, #tpu.memory_space<vmem>>, %arg20: memref<2x96xf32, #tpu.memory_space<vmem>>) attributes {dimension_semantics = [], scalar_prefetch = 0 : i64, scratch_operands = 0 : i64, tpu.core_type = #tpu.core_type<tc>} {
    %c0 = arith.constant 0 : index
    %c0_0 = arith.constant 0 : index
    %0 = vector.load %arg1[%c0, %c0_0] : memref<16x16xf32, #tpu.memory_space<vmem>>, vector<16x16xf32>
    %c0_1 = arith.constant 0 : index
    %c0_2 = arith.constant 0 : index
    %1 = vector.load %arg0[%c0_1, %c0_2] : memref<16x64xf32, #tpu.memory_space<vmem>>, vector<16x64xf32>
    %c0_3 = arith.constant 0 : index
    %c0_4 = arith.constant 0 : index
    %2 = vector.load %arg2[%c0_3, %c0_4] : memref<1x64xf32, #tpu.memory_space<vmem>>, vector<1x64xf32>
    %c0_5 = arith.constant 0 : index
    %c0_6 = arith.constant 0 : index
    %3 = vector.load %arg3[%c0_5, %c0_6] : memref<1x64xf32, #tpu.memory_space<vmem>>, vector<1x64xf32>
    %cst = arith.constant dense<0.000000e+00> : vector<16xf32>
    %4 = vector.multi_reduction <add>, %1, %cst [1] : vector<16x64xf32> to vector<16xf32>
    %5 = vector.shape_cast %4 : vector<16xf32> to vector<16x1xf32>
    %cst_7 = arith.constant 6.400000e+01 : f32
    %6 = vector.broadcast %cst_7 : f32 to vector<16x1xf32>
    %7 = arith.divf %5, %6 : vector<16x1xf32>
    %8 = vector.broadcast %7 : vector<16x1xf32> to vector<16x64xf32>
    %9 = arith.subf %1, %8 : vector<16x64xf32>
    %10 = arith.mulf %9, %9 : vector<16x64xf32>
    %cst_8 = arith.constant dense<0.000000e+00> : vector<16xf32>
    %11 = vector.multi_reduction <add>, %10, %cst_8 [1] : vector<16x64xf32> to vector<16xf32>
    %12 = vector.shape_cast %11 : vector<16xf32> to vector<16x1xf32>
    %cst_9 = arith.constant 6.400000e+01 : f32
    %13 = vector.broadcast %cst_9 : f32 to vector<16x1xf32>
    %14 = arith.divf %12, %13 : vector<16x1xf32>
    %15 = vector.broadcast %7 : vector<16x1xf32> to vector<16x64xf32>
    %16 = arith.subf %1, %15 : vector<16x64xf32>
    %cst_10 = arith.constant 9.99999996E-13 : f32
    %17 = vector.broadcast %cst_10 : f32 to vector<16x1xf32>
    %18 = arith.addf %14, %17 : vector<16x1xf32>
    %19 = math.rsqrt %18 : vector<16x1xf32>
    %20 = vector.broadcast %19 : vector<16x1xf32> to vector<16x64xf32>
    %21 = arith.mulf %16, %20 : vector<16x64xf32>
    %22 = vector.broadcast %2 : vector<1x64xf32> to vector<16x64xf32>
    %23 = arith.mulf %21, %22 : vector<16x64xf32>
    %24 = vector.broadcast %3 : vector<1x64xf32> to vector<16x64xf32>
    %25 = arith.addf %23, %24 : vector<16x64xf32>
    %c0_11 = arith.constant 0 : index
    %c0_12 = arith.constant 0 : index
    %c0_13 = arith.constant 0 : index
    %26 = vector.load %arg4[%c0_11, %c0_12, %c0_13] : memref<2x64x192xf32, #tpu.memory_space<vmem>>, vector<1x64x192xf32>
    %27 = vector.shape_cast %26 : vector<1x64x192xf32> to vector<64x192xf32>
    %cst_14 = arith.constant dense<0.000000e+00> : vector<16x192xf32>
    %28 = tpu.matmul %25, %27, %cst_14 {dimension_numbers = #tpu.dot_dimension_numbers<[1], [0], [0], [1], [0, 0, 1, 1], [], []>} : vector<16x64xf32>, vector<64x192xf32>, vector<16x192xf32> -> vector<16x192xf32>
    %c0_15 = arith.constant 0 : index
    %c0_16 = arith.constant 0 : index
    %c0_17 = arith.constant 0 : index
    %29 = vector.load %arg5[%c0_15, %c0_16, %c0_17] : memref<2x1x192xf32, #tpu.memory_space<vmem>>, vector<1x1x192xf32>
    %30 = vector.shape_cast %29 : vector<1x1x192xf32> to vector<1x192xf32>
    %31 = vector.broadcast %30 : vector<1x192xf32> to vector<16x192xf32>
    %32 = arith.addf %28, %31 : vector<16x192xf32>
    %33 = vector.extract_strided_slice %32 {offsets = [0, 0], sizes = [16, 64], strides = [1, 1]} : vector<16x192xf32> to vector<16x64xf32>
    %cst_18 = arith.constant 2.500000e-01 : f32
    %34 = vector.broadcast %cst_18 : f32 to vector<16x64xf32>
    %35 = arith.mulf %33, %34 : vector<16x64xf32>
    %36 = vector.extract_strided_slice %32 {offsets = [0, 64], sizes = [16, 64], strides = [1, 1]} : vector<16x192xf32> to vector<16x64xf32>
    %37 = vector.extract_strided_slice %32 {offsets = [0, 128], sizes = [16, 64], strides = [1, 1]} : vector<16x192xf32> to vector<16x64xf32>
    %38 = vector.extract_strided_slice %35 {offsets = [0, 0], sizes = [16, 16], strides = [1, 1]} : vector<16x64xf32> to vector<16x16xf32>
    %39 = vector.extract_strided_slice %36 {offsets = [0, 0], sizes = [16, 16], strides = [1, 1]} : vector<16x64xf32> to vector<16x16xf32>
    %40 = tpu.transpose %39, [1, 0] : vector<16x16xf32> -> vector<16x16xf32>
    %cst_19 = arith.constant dense<0.000000e+00> : vector<16x16xf32>
    %41 = tpu.matmul %38, %40, %cst_19 {dimension_numbers = #tpu.dot_dimension_numbers<[1], [0], [0], [1], [0, 0, 1, 1], [], []>} : vector<16x16xf32>, vector<16x16xf32>, vector<16x16xf32> -> vector<16x16xf32>
    %42 = arith.addf %41, %0 : vector<16x16xf32>
    %cst_20 = arith.constant dense<0xFF800000> : vector<16xf32>
    %43 = vector.multi_reduction <maximumf>, %42, %cst_20 [1] : vector<16x16xf32> to vector<16xf32>
    %44 = vector.shape_cast %43 : vector<16xf32> to vector<16x1xf32>
    %45 = vector.broadcast %44 : vector<16x1xf32> to vector<16x16xf32>
    %46 = arith.subf %42, %45 : vector<16x16xf32>
    %47 = math.exp %46 : vector<16x16xf32>
    %cst_21 = arith.constant dense<0.000000e+00> : vector<16xf32>
    %48 = vector.multi_reduction <add>, %47, %cst_21 [1] : vector<16x16xf32> to vector<16xf32>
    %49 = vector.shape_cast %48 : vector<16xf32> to vector<16x1xf32>
    %50 = tpu.reciprocal %49 {approx = true} : vector<16x1xf32> -> vector<16x1xf32>
    %51 = vector.broadcast %50 : vector<16x1xf32> to vector<16x16xf32>
    %52 = arith.mulf %47, %51 : vector<16x16xf32>
    %53 = vector.extract_strided_slice %37 {offsets = [0, 0], sizes = [16, 16], strides = [1, 1]} : vector<16x64xf32> to vector<16x16xf32>
    %cst_22 = arith.constant dense<0.000000e+00> : vector<16x16xf32>
    %54 = tpu.matmul %52, %53, %cst_22 {dimension_numbers = #tpu.dot_dimension_numbers<[1], [0], [0], [1], [0, 0, 1, 1], [], []>} : vector<16x16xf32>, vector<16x16xf32>, vector<16x16xf32> -> vector<16x16xf32>
    %55 = vector.extract_strided_slice %35 {offsets = [0, 16], sizes = [16, 16], strides = [1, 1]} : vector<16x64xf32> to vector<16x16xf32>
    %56 = vector.extract_strided_slice %36 {offsets = [0, 16], sizes = [16, 16], strides = [1, 1]} : vector<16x64xf32> to vector<16x16xf32>
    %57 = tpu.transpose %56, [1, 0] : vector<16x16xf32> -> vector<16x16xf32>
    %cst_23 = arith.constant dense<0.000000e+00> : vector<16x16xf32>
    %58 = tpu.matmul %55, %57, %cst_23 {dimension_numbers = #tpu.dot_dimension_numbers<[1], [0], [0], [1], [0, 0, 1, 1], [], []>} : vector<16x16xf32>, vector<16x16xf32>, vector<16x16xf32> -> vector<16x16xf32>
    %59 = arith.addf %58, %0 : vector<16x16xf32>
    %cst_24 = arith.constant dense<0xFF800000> : vector<16xf32>
    %60 = vector.multi_reduction <maximumf>, %59, %cst_24 [1] : vector<16x16xf32> to vector<16xf32>
    %61 = vector.shape_cast %60 : vector<16xf32> to vector<16x1xf32>
    %62 = vector.broadcast %61 : vector<16x1xf32> to vector<16x16xf32>
    %63 = arith.subf %59, %62 : vector<16x16xf32>
    %64 = math.exp %63 : vector<16x16xf32>
    %cst_25 = arith.constant dense<0.000000e+00> : vector<16xf32>
    %65 = vector.multi_reduction <add>, %64, %cst_25 [1] : vector<16x16xf32> to vector<16xf32>
    %66 = vector.shape_cast %65 : vector<16xf32> to vector<16x1xf32>
    %67 = tpu.reciprocal %66 {approx = true} : vector<16x1xf32> -> vector<16x1xf32>
    %68 = vector.broadcast %67 : vector<16x1xf32> to vector<16x16xf32>
    %69 = arith.mulf %64, %68 : vector<16x16xf32>
    %70 = vector.extract_strided_slice %37 {offsets = [0, 16], sizes = [16, 16], strides = [1, 1]} : vector<16x64xf32> to vector<16x16xf32>
    %cst_26 = arith.constant dense<0.000000e+00> : vector<16x16xf32>
    %71 = tpu.matmul %69, %70, %cst_26 {dimension_numbers = #tpu.dot_dimension_numbers<[1], [0], [0], [1], [0, 0, 1, 1], [], []>} : vector<16x16xf32>, vector<16x16xf32>, vector<16x16xf32> -> vector<16x16xf32>
    %72 = vector.extract_strided_slice %35 {offsets = [0, 32], sizes = [16, 16], strides = [1, 1]} : vector<16x64xf32> to vector<16x16xf32>
    %73 = vector.extract_strided_slice %36 {offsets = [0, 32], sizes = [16, 16], strides = [1, 1]} : vector<16x64xf32> to vector<16x16xf32>
    %74 = tpu.transpose %73, [1, 0] : vector<16x16xf32> -> vector<16x16xf32>
    %cst_27 = arith.constant dense<0.000000e+00> : vector<16x16xf32>
    %75 = tpu.matmul %72, %74, %cst_27 {dimension_numbers = #tpu.dot_dimension_numbers<[1], [0], [0], [1], [0, 0, 1, 1], [], []>} : vector<16x16xf32>, vector<16x16xf32>, vector<16x16xf32> -> vector<16x16xf32>
    %76 = arith.addf %75, %0 : vector<16x16xf32>
    %cst_28 = arith.constant dense<0xFF800000> : vector<16xf32>
    %77 = vector.multi_reduction <maximumf>, %76, %cst_28 [1] : vector<16x16xf32> to vector<16xf32>
    %78 = vector.shape_cast %77 : vector<16xf32> to vector<16x1xf32>
    %79 = vector.broadcast %78 : vector<16x1xf32> to vector<16x16xf32>
    %80 = arith.subf %76, %79 : vector<16x16xf32>
    %81 = math.exp %80 : vector<16x16xf32>
    %cst_29 = arith.constant dense<0.000000e+00> : vector<16xf32>
    %82 = vector.multi_reduction <add>, %81, %cst_29 [1] : vector<16x16xf32> to vector<16xf32>
    %83 = vector.shape_cast %82 : vector<16xf32> to vector<16x1xf32>
    %84 = tpu.reciprocal %83 {approx = true} : vector<16x1xf32> -> vector<16x1xf32>
    %85 = vector.broadcast %84 : vector<16x1xf32> to vector<16x16xf32>
    %86 = arith.mulf %81, %85 : vector<16x16xf32>
    %87 = vector.extract_strided_slice %37 {offsets = [0, 32], sizes = [16, 16], strides = [1, 1]} : vector<16x64xf32> to vector<16x16xf32>
    %cst_30 = arith.constant dense<0.000000e+00> : vector<16x16xf32>
    %88 = tpu.matmul %86, %87, %cst_30 {dimension_numbers = #tpu.dot_dimension_numbers<[1], [0], [0], [1], [0, 0, 1, 1], [], []>} : vector<16x16xf32>, vector<16x16xf32>, vector<16x16xf32> -> vector<16x16xf32>
    %89 = vector.extract_strided_slice %35 {offsets = [0, 48], sizes = [16, 16], strides = [1, 1]} : vector<16x64xf32> to vector<16x16xf32>
    %90 = vector.extract_strided_slice %36 {offsets = [0, 48], sizes = [16, 16], strides = [1, 1]} : vector<16x64xf32> to vector<16x16xf32>
    %91 = tpu.transpose %90, [1, 0] : vector<16x16xf32> -> vector<16x16xf32>
    %cst_31 = arith.constant dense<0.000000e+00> : vector<16x16xf32>
    %92 = tpu.matmul %89, %91, %cst_31 {dimension_numbers = #tpu.dot_dimension_numbers<[1], [0], [0], [1], [0, 0, 1, 1], [], []>} : vector<16x16xf32>, vector<16x16xf32>, vector<16x16xf32> -> vector<16x16xf32>
    %93 = arith.addf %92, %0 : vector<16x16xf32>
    %cst_32 = arith.constant dense<0xFF800000> : vector<16xf32>
    %94 = vector.multi_reduction <maximumf>, %93, %cst_32 [1] : vector<16x16xf32> to vector<16xf32>
    %95 = vector.shape_cast %94 : vector<16xf32> to vector<16x1xf32>
    %96 = vector.broadcast %95 : vector<16x1xf32> to vector<16x16xf32>
    %97 = arith.subf %93, %96 : vector<16x16xf32>
    %98 = math.exp %97 : vector<16x16xf32>
    %cst_33 = arith.constant dense<0.000000e+00> : vector<16xf32>
    %99 = vector.multi_reduction <add>, %98, %cst_33 [1] : vector<16x16xf32> to vector<16xf32>
    %100 = vector.shape_cast %99 : vector<16xf32> to vector<16x1xf32>
    %101 = tpu.reciprocal %100 {approx = true} : vector<16x1xf32> -> vector<16x1xf32>
    %102 = vector.broadcast %101 : vector<16x1xf32> to vector<16x16xf32>
    %103 = arith.mulf %98, %102 : vector<16x16xf32>
    %104 = vector.extract_strided_slice %37 {offsets = [0, 48], sizes = [16, 16], strides = [1, 1]} : vector<16x64xf32> to vector<16x16xf32>
    %cst_34 = arith.constant dense<0.000000e+00> : vector<16x16xf32>
    %105 = tpu.matmul %103, %104, %cst_34 {dimension_numbers = #tpu.dot_dimension_numbers<[1], [0], [0], [1], [0, 0, 1, 1], [], []>} : vector<16x16xf32>, vector<16x16xf32>, vector<16x16xf32> -> vector<16x16xf32>
    %106 = tpu.concatenate %54, %71, %88, %105 in 1 : vector<16x16xf32>, vector<16x16xf32>, vector<16x16xf32>, vector<16x16xf32> -> vector<16x64xf32>
    %c0_35 = arith.constant 0 : index
    %c0_36 = arith.constant 0 : index
    %c0_37 = arith.constant 0 : index
    %107 = vector.load %arg6[%c0_35, %c0_36, %c0_37] : memref<2x64x64xf32, #tpu.memory_space<vmem>>, vector<1x64x64xf32>
    %108 = vector.shape_cast %107 : vector<1x64x64xf32> to vector<64x64xf32>
    %cst_38 = arith.constant dense<0.000000e+00> : vector<16x64xf32>
    %109 = tpu.matmul %106, %108, %cst_38 {dimension_numbers = #tpu.dot_dimension_numbers<[1], [0], [0], [1], [0, 0, 1, 1], [], []>} : vector<16x64xf32>, vector<64x64xf32>, vector<16x64xf32> -> vector<16x64xf32>
    %c0_39 = arith.constant 0 : index
    %c0_40 = arith.constant 0 : index
    %c0_41 = arith.constant 0 : index
    %110 = vector.load %arg7[%c0_39, %c0_40, %c0_41] : memref<2x1x64xf32, #tpu.memory_space<vmem>>, vector<1x1x64xf32>
    %111 = vector.shape_cast %110 : vector<1x1x64xf32> to vector<1x64xf32>
    %112 = vector.broadcast %111 : vector<1x64xf32> to vector<16x64xf32>
    %113 = arith.addf %109, %112 : vector<16x64xf32>
    %114 = arith.addf %113, %25 : vector<16x64xf32>
    %c0_42 = arith.constant 0 : index
    %c0_43 = arith.constant 0 : index
    %c0_44 = arith.constant 0 : index
    %115 = vector.load %arg8[%c0_42, %c0_43, %c0_44] : memref<2x1x64xf32, #tpu.memory_space<vmem>>, vector<1x1x64xf32>
    %116 = vector.shape_cast %115 : vector<1x1x64xf32> to vector<1x64xf32>
    %c0_45 = arith.constant 0 : index
    %c0_46 = arith.constant 0 : index
    %c0_47 = arith.constant 0 : index
    %117 = vector.load %arg9[%c0_45, %c0_46, %c0_47] : memref<2x1x64xf32, #tpu.memory_space<vmem>>, vector<1x1x64xf32>
    %118 = vector.shape_cast %117 : vector<1x1x64xf32> to vector<1x64xf32>
    %cst_48 = arith.constant dense<0.000000e+00> : vector<16xf32>
    %119 = vector.multi_reduction <add>, %114, %cst_48 [1] : vector<16x64xf32> to vector<16xf32>
    %120 = vector.shape_cast %119 : vector<16xf32> to vector<16x1xf32>
    %cst_49 = arith.constant 6.400000e+01 : f32
    %121 = vector.broadcast %cst_49 : f32 to vector<16x1xf32>
    %122 = arith.divf %120, %121 : vector<16x1xf32>
    %123 = vector.broadcast %122 : vector<16x1xf32> to vector<16x64xf32>
    %124 = arith.subf %114, %123 : vector<16x64xf32>
    %125 = arith.mulf %124, %124 : vector<16x64xf32>
    %cst_50 = arith.constant dense<0.000000e+00> : vector<16xf32>
    %126 = vector.multi_reduction <add>, %125, %cst_50 [1] : vector<16x64xf32> to vector<16xf32>
    %127 = vector.shape_cast %126 : vector<16xf32> to vector<16x1xf32>
    %cst_51 = arith.constant 6.400000e+01 : f32
    %128 = vector.broadcast %cst_51 : f32 to vector<16x1xf32>
    %129 = arith.divf %127, %128 : vector<16x1xf32>
    %130 = vector.broadcast %122 : vector<16x1xf32> to vector<16x64xf32>
    %131 = arith.subf %114, %130 : vector<16x64xf32>
    %cst_52 = arith.constant 9.99999996E-13 : f32
    %132 = vector.broadcast %cst_52 : f32 to vector<16x1xf32>
    %133 = arith.addf %129, %132 : vector<16x1xf32>
    %134 = math.rsqrt %133 : vector<16x1xf32>
    %135 = vector.broadcast %134 : vector<16x1xf32> to vector<16x64xf32>
    %136 = arith.mulf %131, %135 : vector<16x64xf32>
    %137 = vector.broadcast %116 : vector<1x64xf32> to vector<16x64xf32>
    %138 = arith.mulf %136, %137 : vector<16x64xf32>
    %139 = vector.broadcast %118 : vector<1x64xf32> to vector<16x64xf32>
    %140 = arith.addf %138, %139 : vector<16x64xf32>
    %c0_53 = arith.constant 0 : index
    %c0_54 = arith.constant 0 : index
    %c0_55 = arith.constant 0 : index
    %141 = vector.load %arg10[%c0_53, %c0_54, %c0_55] : memref<2x64x256xf32, #tpu.memory_space<vmem>>, vector<1x64x256xf32>
    %142 = vector.shape_cast %141 : vector<1x64x256xf32> to vector<64x256xf32>
    %cst_56 = arith.constant dense<0.000000e+00> : vector<16x256xf32>
    %143 = tpu.matmul %140, %142, %cst_56 {dimension_numbers = #tpu.dot_dimension_numbers<[1], [0], [0], [1], [0, 0, 1, 1], [], []>} : vector<16x64xf32>, vector<64x256xf32>, vector<16x256xf32> -> vector<16x256xf32>
    %c0_57 = arith.constant 0 : index
    %c0_58 = arith.constant 0 : index
    %c0_59 = arith.constant 0 : index
    %144 = vector.load %arg11[%c0_57, %c0_58, %c0_59] : memref<2x1x256xf32, #tpu.memory_space<vmem>>, vector<1x1x256xf32>
    %145 = vector.shape_cast %144 : vector<1x1x256xf32> to vector<1x256xf32>
    %146 = vector.broadcast %145 : vector<1x256xf32> to vector<16x256xf32>
    %147 = arith.addf %143, %146 : vector<16x256xf32>
    %148 = arith.mulf %147, %147 : vector<16x256xf32>
    %149 = arith.mulf %147, %148 : vector<16x256xf32>
    %cst_60 = arith.constant 4.471500e-02 : f32
    %150 = vector.broadcast %cst_60 : f32 to vector<16x256xf32>
    %151 = arith.mulf %150, %149 : vector<16x256xf32>
    %152 = arith.addf %147, %151 : vector<16x256xf32>
    %cst_61 = arith.constant 0.797884583 : f32
    %153 = vector.broadcast %cst_61 : f32 to vector<16x256xf32>
    %154 = arith.mulf %153, %152 : vector<16x256xf32>
    %155 = math.tanh %154 : vector<16x256xf32>
    %cst_62 = arith.constant 1.000000e+00 : f32
    %156 = vector.broadcast %cst_62 : f32 to vector<16x256xf32>
    %157 = arith.addf %156, %155 : vector<16x256xf32>
    %cst_63 = arith.constant 5.000000e-01 : f32
    %158 = vector.broadcast %cst_63 : f32 to vector<16x256xf32>
    %159 = arith.mulf %158, %157 : vector<16x256xf32>
    %160 = arith.mulf %147, %159 : vector<16x256xf32>
    %c0_64 = arith.constant 0 : index
    %c0_65 = arith.constant 0 : index
    %c0_66 = arith.constant 0 : index
    %161 = vector.load %arg12[%c0_64, %c0_65, %c0_66] : memref<2x256x64xf32, #tpu.memory_space<vmem>>, vector<1x256x64xf32>
    %162 = vector.shape_cast %161 : vector<1x256x64xf32> to vector<256x64xf32>
    %cst_67 = arith.constant dense<0.000000e+00> : vector<16x64xf32>
    %163 = tpu.matmul %160, %162, %cst_67 {dimension_numbers = #tpu.dot_dimension_numbers<[1], [0], [0], [1], [0, 0, 1, 1], [], []>} : vector<16x256xf32>, vector<256x64xf32>, vector<16x64xf32> -> vector<16x64xf32>
    %c0_68 = arith.constant 0 : index
    %c0_69 = arith.constant 0 : index
    %c0_70 = arith.constant 0 : index
    %164 = vector.load %arg13[%c0_68, %c0_69, %c0_70] : memref<2x1x64xf32, #tpu.memory_space<vmem>>, vector<1x1x64xf32>
    %165 = vector.shape_cast %164 : vector<1x1x64xf32> to vector<1x64xf32>
    %166 = vector.broadcast %165 : vector<1x64xf32> to vector<16x64xf32>
    %167 = arith.addf %163, %166 : vector<16x64xf32>
    %168 = arith.addf %167, %140 : vector<16x64xf32>
    %c0_71 = arith.constant 0 : index
    %c0_72 = arith.constant 0 : index
    %c0_73 = arith.constant 0 : index
    %169 = vector.load %arg14[%c0_71, %c0_72, %c0_73] : memref<2x1x64xf32, #tpu.memory_space<vmem>>, vector<1x1x64xf32>
    %170 = vector.shape_cast %169 : vector<1x1x64xf32> to vector<1x64xf32>
    %c0_74 = arith.constant 0 : index
    %c0_75 = arith.constant 0 : index
    %c0_76 = arith.constant 0 : index
    %171 = vector.load %arg15[%c0_74, %c0_75, %c0_76] : memref<2x1x64xf32, #tpu.memory_space<vmem>>, vector<1x1x64xf32>
    %172 = vector.shape_cast %171 : vector<1x1x64xf32> to vector<1x64xf32>
    %cst_77 = arith.constant dense<0.000000e+00> : vector<16xf32>
    %173 = vector.multi_reduction <add>, %168, %cst_77 [1] : vector<16x64xf32> to vector<16xf32>
    %174 = vector.shape_cast %173 : vector<16xf32> to vector<16x1xf32>
    %cst_78 = arith.constant 6.400000e+01 : f32
    %175 = vector.broadcast %cst_78 : f32 to vector<16x1xf32>
    %176 = arith.divf %174, %175 : vector<16x1xf32>
    %177 = vector.broadcast %176 : vector<16x1xf32> to vector<16x64xf32>
    %178 = arith.subf %168, %177 : vector<16x64xf32>
    %179 = arith.mulf %178, %178 : vector<16x64xf32>
    %cst_79 = arith.constant dense<0.000000e+00> : vector<16xf32>
    %180 = vector.multi_reduction <add>, %179, %cst_79 [1] : vector<16x64xf32> to vector<16xf32>
    %181 = vector.shape_cast %180 : vector<16xf32> to vector<16x1xf32>
    %cst_80 = arith.constant 6.400000e+01 : f32
    %182 = vector.broadcast %cst_80 : f32 to vector<16x1xf32>
    %183 = arith.divf %181, %182 : vector<16x1xf32>
    %184 = vector.broadcast %176 : vector<16x1xf32> to vector<16x64xf32>
    %185 = arith.subf %168, %184 : vector<16x64xf32>
    %cst_81 = arith.constant 9.99999996E-13 : f32
    %186 = vector.broadcast %cst_81 : f32 to vector<16x1xf32>
    %187 = arith.addf %183, %186 : vector<16x1xf32>
    %188 = math.rsqrt %187 : vector<16x1xf32>
    %189 = vector.broadcast %188 : vector<16x1xf32> to vector<16x64xf32>
    %190 = arith.mulf %185, %189 : vector<16x64xf32>
    %191 = vector.broadcast %170 : vector<1x64xf32> to vector<16x64xf32>
    %192 = arith.mulf %190, %191 : vector<16x64xf32>
    %193 = vector.broadcast %172 : vector<1x64xf32> to vector<16x64xf32>
    %194 = arith.addf %192, %193 : vector<16x64xf32>
    %c1 = arith.constant 1 : index
    %c0_82 = arith.constant 0 : index
    %c0_83 = arith.constant 0 : index
    %195 = vector.load %arg4[%c1, %c0_82, %c0_83] : memref<2x64x192xf32, #tpu.memory_space<vmem>>, vector<1x64x192xf32>
    %196 = vector.shape_cast %195 : vector<1x64x192xf32> to vector<64x192xf32>
    %cst_84 = arith.constant dense<0.000000e+00> : vector<16x192xf32>
    %197 = tpu.matmul %194, %196, %cst_84 {dimension_numbers = #tpu.dot_dimension_numbers<[1], [0], [0], [1], [0, 0, 1, 1], [], []>} : vector<16x64xf32>, vector<64x192xf32>, vector<16x192xf32> -> vector<16x192xf32>
    %c1_85 = arith.constant 1 : index
    %c0_86 = arith.constant 0 : index
    %c0_87 = arith.constant 0 : index
    %198 = vector.load %arg5[%c1_85, %c0_86, %c0_87] : memref<2x1x192xf32, #tpu.memory_space<vmem>>, vector<1x1x192xf32>
    %199 = vector.shape_cast %198 : vector<1x1x192xf32> to vector<1x192xf32>
    %200 = vector.broadcast %199 : vector<1x192xf32> to vector<16x192xf32>
    %201 = arith.addf %197, %200 : vector<16x192xf32>
    %202 = vector.extract_strided_slice %201 {offsets = [0, 0], sizes = [16, 64], strides = [1, 1]} : vector<16x192xf32> to vector<16x64xf32>
    %cst_88 = arith.constant 2.500000e-01 : f32
    %203 = vector.broadcast %cst_88 : f32 to vector<16x64xf32>
    %204 = arith.mulf %202, %203 : vector<16x64xf32>
    %205 = vector.extract_strided_slice %201 {offsets = [0, 64], sizes = [16, 64], strides = [1, 1]} : vector<16x192xf32> to vector<16x64xf32>
    %206 = vector.extract_strided_slice %201 {offsets = [0, 128], sizes = [16, 64], strides = [1, 1]} : vector<16x192xf32> to vector<16x64xf32>
    %207 = vector.extract_strided_slice %204 {offsets = [0, 0], sizes = [16, 16], strides = [1, 1]} : vector<16x64xf32> to vector<16x16xf32>
    %208 = vector.extract_strided_slice %205 {offsets = [0, 0], sizes = [16, 16], strides = [1, 1]} : vector<16x64xf32> to vector<16x16xf32>
    %209 = tpu.transpose %208, [1, 0] : vector<16x16xf32> -> vector<16x16xf32>
    %cst_89 = arith.constant dense<0.000000e+00> : vector<16x16xf32>
    %210 = tpu.matmul %207, %209, %cst_89 {dimension_numbers = #tpu.dot_dimension_numbers<[1], [0], [0], [1], [0, 0, 1, 1], [], []>} : vector<16x16xf32>, vector<16x16xf32>, vector<16x16xf32> -> vector<16x16xf32>
    %211 = arith.addf %210, %0 : vector<16x16xf32>
    %cst_90 = arith.constant dense<0xFF800000> : vector<16xf32>
    %212 = vector.multi_reduction <maximumf>, %211, %cst_90 [1] : vector<16x16xf32> to vector<16xf32>
    %213 = vector.shape_cast %212 : vector<16xf32> to vector<16x1xf32>
    %214 = vector.broadcast %213 : vector<16x1xf32> to vector<16x16xf32>
    %215 = arith.subf %211, %214 : vector<16x16xf32>
    %216 = math.exp %215 : vector<16x16xf32>
    %cst_91 = arith.constant dense<0.000000e+00> : vector<16xf32>
    %217 = vector.multi_reduction <add>, %216, %cst_91 [1] : vector<16x16xf32> to vector<16xf32>
    %218 = vector.shape_cast %217 : vector<16xf32> to vector<16x1xf32>
    %219 = tpu.reciprocal %218 {approx = true} : vector<16x1xf32> -> vector<16x1xf32>
    %220 = vector.broadcast %219 : vector<16x1xf32> to vector<16x16xf32>
    %221 = arith.mulf %216, %220 : vector<16x16xf32>
    %222 = vector.extract_strided_slice %206 {offsets = [0, 0], sizes = [16, 16], strides = [1, 1]} : vector<16x64xf32> to vector<16x16xf32>
    %cst_92 = arith.constant dense<0.000000e+00> : vector<16x16xf32>
    %223 = tpu.matmul %221, %222, %cst_92 {dimension_numbers = #tpu.dot_dimension_numbers<[1], [0], [0], [1], [0, 0, 1, 1], [], []>} : vector<16x16xf32>, vector<16x16xf32>, vector<16x16xf32> -> vector<16x16xf32>
    %224 = vector.extract_strided_slice %204 {offsets = [0, 16], sizes = [16, 16], strides = [1, 1]} : vector<16x64xf32> to vector<16x16xf32>
    %225 = vector.extract_strided_slice %205 {offsets = [0, 16], sizes = [16, 16], strides = [1, 1]} : vector<16x64xf32> to vector<16x16xf32>
    %226 = tpu.transpose %225, [1, 0] : vector<16x16xf32> -> vector<16x16xf32>
    %cst_93 = arith.constant dense<0.000000e+00> : vector<16x16xf32>
    %227 = tpu.matmul %224, %226, %cst_93 {dimension_numbers = #tpu.dot_dimension_numbers<[1], [0], [0], [1], [0, 0, 1, 1], [], []>} : vector<16x16xf32>, vector<16x16xf32>, vector<16x16xf32> -> vector<16x16xf32>
    %228 = arith.addf %227, %0 : vector<16x16xf32>
    %cst_94 = arith.constant dense<0xFF800000> : vector<16xf32>
    %229 = vector.multi_reduction <maximumf>, %228, %cst_94 [1] : vector<16x16xf32> to vector<16xf32>
    %230 = vector.shape_cast %229 : vector<16xf32> to vector<16x1xf32>
    %231 = vector.broadcast %230 : vector<16x1xf32> to vector<16x16xf32>
    %232 = arith.subf %228, %231 : vector<16x16xf32>
    %233 = math.exp %232 : vector<16x16xf32>
    %cst_95 = arith.constant dense<0.000000e+00> : vector<16xf32>
    %234 = vector.multi_reduction <add>, %233, %cst_95 [1] : vector<16x16xf32> to vector<16xf32>
    %235 = vector.shape_cast %234 : vector<16xf32> to vector<16x1xf32>
    %236 = tpu.reciprocal %235 {approx = true} : vector<16x1xf32> -> vector<16x1xf32>
    %237 = vector.broadcast %236 : vector<16x1xf32> to vector<16x16xf32>
    %238 = arith.mulf %233, %237 : vector<16x16xf32>
    %239 = vector.extract_strided_slice %206 {offsets = [0, 16], sizes = [16, 16], strides = [1, 1]} : vector<16x64xf32> to vector<16x16xf32>
    %cst_96 = arith.constant dense<0.000000e+00> : vector<16x16xf32>
    %240 = tpu.matmul %238, %239, %cst_96 {dimension_numbers = #tpu.dot_dimension_numbers<[1], [0], [0], [1], [0, 0, 1, 1], [], []>} : vector<16x16xf32>, vector<16x16xf32>, vector<16x16xf32> -> vector<16x16xf32>
    %241 = vector.extract_strided_slice %204 {offsets = [0, 32], sizes = [16, 16], strides = [1, 1]} : vector<16x64xf32> to vector<16x16xf32>
    %242 = vector.extract_strided_slice %205 {offsets = [0, 32], sizes = [16, 16], strides = [1, 1]} : vector<16x64xf32> to vector<16x16xf32>
    %243 = tpu.transpose %242, [1, 0] : vector<16x16xf32> -> vector<16x16xf32>
    %cst_97 = arith.constant dense<0.000000e+00> : vector<16x16xf32>
    %244 = tpu.matmul %241, %243, %cst_97 {dimension_numbers = #tpu.dot_dimension_numbers<[1], [0], [0], [1], [0, 0, 1, 1], [], []>} : vector<16x16xf32>, vector<16x16xf32>, vector<16x16xf32> -> vector<16x16xf32>
    %245 = arith.addf %244, %0 : vector<16x16xf32>
    %cst_98 = arith.constant dense<0xFF800000> : vector<16xf32>
    %246 = vector.multi_reduction <maximumf>, %245, %cst_98 [1] : vector<16x16xf32> to vector<16xf32>
    %247 = vector.shape_cast %246 : vector<16xf32> to vector<16x1xf32>
    %248 = vector.broadcast %247 : vector<16x1xf32> to vector<16x16xf32>
    %249 = arith.subf %245, %248 : vector<16x16xf32>
    %250 = math.exp %249 : vector<16x16xf32>
    %cst_99 = arith.constant dense<0.000000e+00> : vector<16xf32>
    %251 = vector.multi_reduction <add>, %250, %cst_99 [1] : vector<16x16xf32> to vector<16xf32>
    %252 = vector.shape_cast %251 : vector<16xf32> to vector<16x1xf32>
    %253 = tpu.reciprocal %252 {approx = true} : vector<16x1xf32> -> vector<16x1xf32>
    %254 = vector.broadcast %253 : vector<16x1xf32> to vector<16x16xf32>
    %255 = arith.mulf %250, %254 : vector<16x16xf32>
    %256 = vector.extract_strided_slice %206 {offsets = [0, 32], sizes = [16, 16], strides = [1, 1]} : vector<16x64xf32> to vector<16x16xf32>
    %cst_100 = arith.constant dense<0.000000e+00> : vector<16x16xf32>
    %257 = tpu.matmul %255, %256, %cst_100 {dimension_numbers = #tpu.dot_dimension_numbers<[1], [0], [0], [1], [0, 0, 1, 1], [], []>} : vector<16x16xf32>, vector<16x16xf32>, vector<16x16xf32> -> vector<16x16xf32>
    %258 = vector.extract_strided_slice %204 {offsets = [0, 48], sizes = [16, 16], strides = [1, 1]} : vector<16x64xf32> to vector<16x16xf32>
    %259 = vector.extract_strided_slice %205 {offsets = [0, 48], sizes = [16, 16], strides = [1, 1]} : vector<16x64xf32> to vector<16x16xf32>
    %260 = tpu.transpose %259, [1, 0] : vector<16x16xf32> -> vector<16x16xf32>
    %cst_101 = arith.constant dense<0.000000e+00> : vector<16x16xf32>
    %261 = tpu.matmul %258, %260, %cst_101 {dimension_numbers = #tpu.dot_dimension_numbers<[1], [0], [0], [1], [0, 0, 1, 1], [], []>} : vector<16x16xf32>, vector<16x16xf32>, vector<16x16xf32> -> vector<16x16xf32>
    %262 = arith.addf %261, %0 : vector<16x16xf32>
    %cst_102 = arith.constant dense<0xFF800000> : vector<16xf32>
    %263 = vector.multi_reduction <maximumf>, %262, %cst_102 [1] : vector<16x16xf32> to vector<16xf32>
    %264 = vector.shape_cast %263 : vector<16xf32> to vector<16x1xf32>
    %265 = vector.broadcast %264 : vector<16x1xf32> to vector<16x16xf32>
    %266 = arith.subf %262, %265 : vector<16x16xf32>
    %267 = math.exp %266 : vector<16x16xf32>
    %cst_103 = arith.constant dense<0.000000e+00> : vector<16xf32>
    %268 = vector.multi_reduction <add>, %267, %cst_103 [1] : vector<16x16xf32> to vector<16xf32>
    %269 = vector.shape_cast %268 : vector<16xf32> to vector<16x1xf32>
    %270 = tpu.reciprocal %269 {approx = true} : vector<16x1xf32> -> vector<16x1xf32>
    %271 = vector.broadcast %270 : vector<16x1xf32> to vector<16x16xf32>
    %272 = arith.mulf %267, %271 : vector<16x16xf32>
    %273 = vector.extract_strided_slice %206 {offsets = [0, 48], sizes = [16, 16], strides = [1, 1]} : vector<16x64xf32> to vector<16x16xf32>
    %cst_104 = arith.constant dense<0.000000e+00> : vector<16x16xf32>
    %274 = tpu.matmul %272, %273, %cst_104 {dimension_numbers = #tpu.dot_dimension_numbers<[1], [0], [0], [1], [0, 0, 1, 1], [], []>} : vector<16x16xf32>, vector<16x16xf32>, vector<16x16xf32> -> vector<16x16xf32>
    %275 = tpu.concatenate %223, %240, %257, %274 in 1 : vector<16x16xf32>, vector<16x16xf32>, vector<16x16xf32>, vector<16x16xf32> -> vector<16x64xf32>
    %c1_105 = arith.constant 1 : index
    %c0_106 = arith.constant 0 : index
    %c0_107 = arith.constant 0 : index
    %276 = vector.load %arg6[%c1_105, %c0_106, %c0_107] : memref<2x64x64xf32, #tpu.memory_space<vmem>>, vector<1x64x64xf32>
    %277 = vector.shape_cast %276 : vector<1x64x64xf32> to vector<64x64xf32>
    %cst_108 = arith.constant dense<0.000000e+00> : vector<16x64xf32>
    %278 = tpu.matmul %275, %277, %cst_108 {dimension_numbers = #tpu.dot_dimension_numbers<[1], [0], [0], [1], [0, 0, 1, 1], [], []>} : vector<16x64xf32>, vector<64x64xf32>, vector<16x64xf32> -> vector<16x64xf32>
    %c1_109 = arith.constant 1 : index
    %c0_110 = arith.constant 0 : index
    %c0_111 = arith.constant 0 : index
    %279 = vector.load %arg7[%c1_109, %c0_110, %c0_111] : memref<2x1x64xf32, #tpu.memory_space<vmem>>, vector<1x1x64xf32>
    %280 = vector.shape_cast %279 : vector<1x1x64xf32> to vector<1x64xf32>
    %281 = vector.broadcast %280 : vector<1x64xf32> to vector<16x64xf32>
    %282 = arith.addf %278, %281 : vector<16x64xf32>
    %283 = arith.addf %282, %194 : vector<16x64xf32>
    %c1_112 = arith.constant 1 : index
    %c0_113 = arith.constant 0 : index
    %c0_114 = arith.constant 0 : index
    %284 = vector.load %arg8[%c1_112, %c0_113, %c0_114] : memref<2x1x64xf32, #tpu.memory_space<vmem>>, vector<1x1x64xf32>
    %285 = vector.shape_cast %284 : vector<1x1x64xf32> to vector<1x64xf32>
    %c1_115 = arith.constant 1 : index
    %c0_116 = arith.constant 0 : index
    %c0_117 = arith.constant 0 : index
    %286 = vector.load %arg9[%c1_115, %c0_116, %c0_117] : memref<2x1x64xf32, #tpu.memory_space<vmem>>, vector<1x1x64xf32>
    %287 = vector.shape_cast %286 : vector<1x1x64xf32> to vector<1x64xf32>
    %cst_118 = arith.constant dense<0.000000e+00> : vector<16xf32>
    %288 = vector.multi_reduction <add>, %283, %cst_118 [1] : vector<16x64xf32> to vector<16xf32>
    %289 = vector.shape_cast %288 : vector<16xf32> to vector<16x1xf32>
    %cst_119 = arith.constant 6.400000e+01 : f32
    %290 = vector.broadcast %cst_119 : f32 to vector<16x1xf32>
    %291 = arith.divf %289, %290 : vector<16x1xf32>
    %292 = vector.broadcast %291 : vector<16x1xf32> to vector<16x64xf32>
    %293 = arith.subf %283, %292 : vector<16x64xf32>
    %294 = arith.mulf %293, %293 : vector<16x64xf32>
    %cst_120 = arith.constant dense<0.000000e+00> : vector<16xf32>
    %295 = vector.multi_reduction <add>, %294, %cst_120 [1] : vector<16x64xf32> to vector<16xf32>
    %296 = vector.shape_cast %295 : vector<16xf32> to vector<16x1xf32>
    %cst_121 = arith.constant 6.400000e+01 : f32
    %297 = vector.broadcast %cst_121 : f32 to vector<16x1xf32>
    %298 = arith.divf %296, %297 : vector<16x1xf32>
    %299 = vector.broadcast %291 : vector<16x1xf32> to vector<16x64xf32>
    %300 = arith.subf %283, %299 : vector<16x64xf32>
    %cst_122 = arith.constant 9.99999996E-13 : f32
    %301 = vector.broadcast %cst_122 : f32 to vector<16x1xf32>
    %302 = arith.addf %298, %301 : vector<16x1xf32>
    %303 = math.rsqrt %302 : vector<16x1xf32>
    %304 = vector.broadcast %303 : vector<16x1xf32> to vector<16x64xf32>
    %305 = arith.mulf %300, %304 : vector<16x64xf32>
    %306 = vector.broadcast %285 : vector<1x64xf32> to vector<16x64xf32>
    %307 = arith.mulf %305, %306 : vector<16x64xf32>
    %308 = vector.broadcast %287 : vector<1x64xf32> to vector<16x64xf32>
    %309 = arith.addf %307, %308 : vector<16x64xf32>
    %c1_123 = arith.constant 1 : index
    %c0_124 = arith.constant 0 : index
    %c0_125 = arith.constant 0 : index
    %310 = vector.load %arg10[%c1_123, %c0_124, %c0_125] : memref<2x64x256xf32, #tpu.memory_space<vmem>>, vector<1x64x256xf32>
    %311 = vector.shape_cast %310 : vector<1x64x256xf32> to vector<64x256xf32>
    %cst_126 = arith.constant dense<0.000000e+00> : vector<16x256xf32>
    %312 = tpu.matmul %309, %311, %cst_126 {dimension_numbers = #tpu.dot_dimension_numbers<[1], [0], [0], [1], [0, 0, 1, 1], [], []>} : vector<16x64xf32>, vector<64x256xf32>, vector<16x256xf32> -> vector<16x256xf32>
    %c1_127 = arith.constant 1 : index
    %c0_128 = arith.constant 0 : index
    %c0_129 = arith.constant 0 : index
    %313 = vector.load %arg11[%c1_127, %c0_128, %c0_129] : memref<2x1x256xf32, #tpu.memory_space<vmem>>, vector<1x1x256xf32>
    %314 = vector.shape_cast %313 : vector<1x1x256xf32> to vector<1x256xf32>
    %315 = vector.broadcast %314 : vector<1x256xf32> to vector<16x256xf32>
    %316 = arith.addf %312, %315 : vector<16x256xf32>
    %317 = arith.mulf %316, %316 : vector<16x256xf32>
    %318 = arith.mulf %316, %317 : vector<16x256xf32>
    %cst_130 = arith.constant 4.471500e-02 : f32
    %319 = vector.broadcast %cst_130 : f32 to vector<16x256xf32>
    %320 = arith.mulf %319, %318 : vector<16x256xf32>
    %321 = arith.addf %316, %320 : vector<16x256xf32>
    %cst_131 = arith.constant 0.797884583 : f32
    %322 = vector.broadcast %cst_131 : f32 to vector<16x256xf32>
    %323 = arith.mulf %322, %321 : vector<16x256xf32>
    %324 = math.tanh %323 : vector<16x256xf32>
    %cst_132 = arith.constant 1.000000e+00 : f32
    %325 = vector.broadcast %cst_132 : f32 to vector<16x256xf32>
    %326 = arith.addf %325, %324 : vector<16x256xf32>
    %cst_133 = arith.constant 5.000000e-01 : f32
    %327 = vector.broadcast %cst_133 : f32 to vector<16x256xf32>
    %328 = arith.mulf %327, %326 : vector<16x256xf32>
    %329 = arith.mulf %316, %328 : vector<16x256xf32>
    %c1_134 = arith.constant 1 : index
    %c0_135 = arith.constant 0 : index
    %c0_136 = arith.constant 0 : index
    %330 = vector.load %arg12[%c1_134, %c0_135, %c0_136] : memref<2x256x64xf32, #tpu.memory_space<vmem>>, vector<1x256x64xf32>
    %331 = vector.shape_cast %330 : vector<1x256x64xf32> to vector<256x64xf32>
    %cst_137 = arith.constant dense<0.000000e+00> : vector<16x64xf32>
    %332 = tpu.matmul %329, %331, %cst_137 {dimension_numbers = #tpu.dot_dimension_numbers<[1], [0], [0], [1], [0, 0, 1, 1], [], []>} : vector<16x256xf32>, vector<256x64xf32>, vector<16x64xf32> -> vector<16x64xf32>
    %c1_138 = arith.constant 1 : index
    %c0_139 = arith.constant 0 : index
    %c0_140 = arith.constant 0 : index
    %333 = vector.load %arg13[%c1_138, %c0_139, %c0_140] : memref<2x1x64xf32, #tpu.memory_space<vmem>>, vector<1x1x64xf32>
    %334 = vector.shape_cast %333 : vector<1x1x64xf32> to vector<1x64xf32>
    %335 = vector.broadcast %334 : vector<1x64xf32> to vector<16x64xf32>
    %336 = arith.addf %332, %335 : vector<16x64xf32>
    %337 = arith.addf %336, %309 : vector<16x64xf32>
    %c1_141 = arith.constant 1 : index
    %c0_142 = arith.constant 0 : index
    %c0_143 = arith.constant 0 : index
    %338 = vector.load %arg14[%c1_141, %c0_142, %c0_143] : memref<2x1x64xf32, #tpu.memory_space<vmem>>, vector<1x1x64xf32>
    %339 = vector.shape_cast %338 : vector<1x1x64xf32> to vector<1x64xf32>
    %c1_144 = arith.constant 1 : index
    %c0_145 = arith.constant 0 : index
    %c0_146 = arith.constant 0 : index
    %340 = vector.load %arg15[%c1_144, %c0_145, %c0_146] : memref<2x1x64xf32, #tpu.memory_space<vmem>>, vector<1x1x64xf32>
    %341 = vector.shape_cast %340 : vector<1x1x64xf32> to vector<1x64xf32>
    %cst_147 = arith.constant dense<0.000000e+00> : vector<16xf32>
    %342 = vector.multi_reduction <add>, %337, %cst_147 [1] : vector<16x64xf32> to vector<16xf32>
    %343 = vector.shape_cast %342 : vector<16xf32> to vector<16x1xf32>
    %cst_148 = arith.constant 6.400000e+01 : f32
    %344 = vector.broadcast %cst_148 : f32 to vector<16x1xf32>
    %345 = arith.divf %343, %344 : vector<16x1xf32>
    %346 = vector.broadcast %345 : vector<16x1xf32> to vector<16x64xf32>
    %347 = arith.subf %337, %346 : vector<16x64xf32>
    %348 = arith.mulf %347, %347 : vector<16x64xf32>
    %cst_149 = arith.constant dense<0.000000e+00> : vector<16xf32>
    %349 = vector.multi_reduction <add>, %348, %cst_149 [1] : vector<16x64xf32> to vector<16xf32>
    %350 = vector.shape_cast %349 : vector<16xf32> to vector<16x1xf32>
    %cst_150 = arith.constant 6.400000e+01 : f32
    %351 = vector.broadcast %cst_150 : f32 to vector<16x1xf32>
    %352 = arith.divf %350, %351 : vector<16x1xf32>
    %353 = vector.broadcast %345 : vector<16x1xf32> to vector<16x64xf32>
    %354 = arith.subf %337, %353 : vector<16x64xf32>
    %cst_151 = arith.constant 9.99999996E-13 : f32
    %355 = vector.broadcast %cst_151 : f32 to vector<16x1xf32>
    %356 = arith.addf %352, %355 : vector<16x1xf32>
    %357 = math.rsqrt %356 : vector<16x1xf32>
    %358 = vector.broadcast %357 : vector<16x1xf32> to vector<16x64xf32>
    %359 = arith.mulf %354, %358 : vector<16x64xf32>
    %360 = vector.broadcast %339 : vector<1x64xf32> to vector<16x64xf32>
    %361 = arith.mulf %359, %360 : vector<16x64xf32>
    %362 = vector.broadcast %341 : vector<1x64xf32> to vector<16x64xf32>
    %363 = arith.addf %361, %362 : vector<16x64xf32>
    %364 = vector.extract_strided_slice %363 {offsets = [0, 0], sizes = [1, 64], strides = [1, 1]} : vector<16x64xf32> to vector<1x64xf32>
    %365 = vector.extract_strided_slice %363 {offsets = [8, 0], sizes = [1, 64], strides = [1, 1]} : vector<16x64xf32> to vector<1x64xf32>
    %366 = tpu.concatenate %364, %365 in 0 : vector<1x64xf32>, vector<1x64xf32> -> vector<2x64xf32>
    %c0_152 = arith.constant 0 : index
    %c0_153 = arith.constant 0 : index
    %367 = vector.load %arg16[%c0_152, %c0_153] : memref<64x128xf32, #tpu.memory_space<vmem>>, vector<64x128xf32>
    %cst_154 = arith.constant dense<0.000000e+00> : vector<2x128xf32>
    %368 = tpu.matmul %366, %367, %cst_154 {dimension_numbers = #tpu.dot_dimension_numbers<[1], [0], [0], [1], [0, 0, 1, 1], [], []>} : vector<2x64xf32>, vector<64x128xf32>, vector<2x128xf32> -> vector<2x128xf32>
    %c0_155 = arith.constant 0 : index
    %c0_156 = arith.constant 0 : index
    %369 = vector.load %arg17[%c0_155, %c0_156] : memref<1x128xf32, #tpu.memory_space<vmem>>, vector<1x128xf32>
    %370 = vector.broadcast %369 : vector<1x128xf32> to vector<2x128xf32>
    %371 = arith.addf %368, %370 : vector<2x128xf32>
    %cst_157 = arith.constant 0.000000e+00 : f32
    %372 = vector.broadcast %cst_157 : f32 to vector<2x128xf32>
    %373 = arith.maximumf %371, %372 : vector<2x128xf32>
    %c0_158 = arith.constant 0 : index
    %c0_159 = arith.constant 0 : index
    %374 = vector.load %arg18[%c0_158, %c0_159] : memref<128x96xf32, #tpu.memory_space<vmem>>, vector<128x96xf32>
    %cst_160 = arith.constant dense<0.000000e+00> : vector<2x96xf32>
    %375 = tpu.matmul %373, %374, %cst_160 {dimension_numbers = #tpu.dot_dimension_numbers<[1], [0], [0], [1], [0, 0, 1, 1], [], []>} : vector<2x128xf32>, vector<128x96xf32>, vector<2x96xf32> -> vector<2x96xf32>
    %c0_161 = arith.constant 0 : index
    %c0_162 = arith.constant 0 : index
    %376 = vector.load %arg19[%c0_161, %c0_162] : memref<1x96xf32, #tpu.memory_space<vmem>>, vector<1x96xf32>
    %377 = vector.broadcast %376 : vector<1x96xf32> to vector<2x96xf32>
    %378 = arith.addf %375, %377 : vector<2x96xf32>
    %c0_163 = arith.constant 0 : index
    %c0_164 = arith.constant 0 : index
    %379 = vector.load %arg20[%c0_163, %c0_164] : memref<2x96xf32, #tpu.memory_space<vmem>>, vector<2x96xf32>
    tpu.vector_store %arg20[%c0_163, %c0_164], %378 {strides = array<i32>} : memref<2x96xf32, #tpu.memory_space<vmem>>, vector<2x96xf32>,
    return
  }
}

</mosaic_0001>

<bundles_post_ra>
// kernel: text_encoder_addfc_forward.1
= control target key start
LH: loop header
LB: loop body
LE: loop exit
PB: predicated region body
PF: predicated region fallthrough
CT: control target
= control target key end

     0   :  { %s4997_s0 = inlined_call_operand.vmem [shape: f32[16,64], index: 0, kind: input, shape index: {}]   ;;  %s4998_s1 = inlined_call_operand.vmem [shape: f32[16,16], index: 1, kind: input, shape index: {}]   ;;  %s4999_s2 = inlined_call_operand.vmem [shape: f32[1,64], index: 2, kind: input, shape index: {}]   ;;  %s5000_s3 = inlined_call_operand.vmem [shape: f32[1,64], index: 3, kind: input, shape index: {}]   ;;  %s5001_s4 = inlined_call_operand.hbm [shape: f32[2,64,192], index: 4, kind: input, shape index: {}]   ;;  %s5002_s5 = inlined_call_operand.vmem [shape: f32[2,1,192], index: 5, kind: input, shape index: {}]   ;;  %s5003_s6 = inlined_call_operand.hbm [shape: f32[2,64,64], index: 6, kind: input, shape index: {}]   ;;  %s5004_s7 = inlined_call_operand.vmem [shape: f32[2,1,64], index: 7, kind: input, shape index: {}, may-alias: {7,9,13,15}]   ;;  %s5005_s8 = inlined_call_operand.vmem [shape: f32[2,1,64], index: 8, kind: input, shape index: {}, may-alias: {8,14}]   ;;  %s5006_s9 = inlined_call_operand.vmem [shape: f32[2,1,64], index: 9, kind: input, shape index: {}, may-alias: {7,9,13,15}]   ;;  %s5007_s10 = inlined_call_operand.vmem [shape: f32[2,64,256], index: 10, kind: input, shape index: {}]   ;;  %s5008_s11 = inlined_call_operand.vmem [shape: f32[2,1,256], index: 11, kind: input, shape index: {}]   ;;  %s5009_s12 = inlined_call_operand.hbm [shape: f32[2,256,64], index: 12, kind: input, shape index: {}]   ;;  %s5010_s13 = inlined_call_operand.vmem [shape: f32[2,1,64], index: 13, kind: input, shape index: {}, may-alias: {7,9,13,15}]   ;;  %s5011_s14 = inlined_call_operand.vmem [shape: f32[2,1,64], index: 14, kind: input, shape index: {}, may-alias: {8,14}]   ;;  %s5012_s15 = inlined_call_operand.vmem [shape: f32[2,1,64], index: 15, kind: input, shape index: {}, may-alias: {7,9,13,15}]   ;;  %s5013_s16 = inlined_call_operand.hbm [shape: f32[64,128], index: 16, kind: input, shape index: {}]   ;;  %s5014_s17 = inlined_call_operand.vmem [shape: f32[1,128], index: 17, kind: input, shape index: {}]   ;;  %s5015_s18 = inlined_call_operand.hbm [shape: f32[128,96], index: 18, kind: input, shape index: {}]   ;;  %s5016_s19 = inlined_call_operand.vmem [shape: f32[1,96], index: 19, kind: input, shape index: {}]   ;;  %s5017_s20 = inlined_call_operand.hbm [shape: f32[2,96], index: 20, kind: output, shape index: {}]  }
   0x1   :  { %5024 = sst [smem:[#allocation16_spill]] %s4997_s0 }
   0x2   :  { %5025 = sst [smem:[#allocation17_spill]] %s4998_s1 }
   0x3   :  { %5026 = sst [smem:[#allocation18_spill]] %s4999_s2 }
   0x4   :  { %5027 = sst [smem:[#allocation19_spill]] %s5000_s3 }
   0x5   :  { %5028 = sst [smem:[#allocation20_spill]] %s5001_s4 }
   0x6   :  { %5029 = sst [smem:[#allocation21_spill]] %s5017_s20 }
   0x7   :  { %25 = vsyncpa [#allocation3], 0 }
   0x8   :  { %26 = vsyncpa [#allocation6], 0 }
   0x9   :  { %27 = vsyncpa [#allocation9], 0 }
   0xa   :  { %28 = vsyncpa [#allocation4], 0  ;;  %s4279_s1 = smov [#allocation5]   ;;  %s4139_s2 = scalar_lea.hbm %s5003_s6, 2048 }
   0xb   :  { %s56_s22 = sshll.u32 %s4279_s1, 4  ;;  %p4140_p0 = scmp.ne.s32.totalorder %s5003_s6, %s4139_s2  ;;  %s57_s22 = int_to_ptr.vmem [resolvable:$true] %s56_s22 }
   0xc   :  { %p4143_p1 = scmp.lt.u32.totalorder %s4139_s2, %s5003_s6 }
   0xe   :  { %p4145_p2 = pnand %p4143_p1, %p4140_p0 }
  0x10   :  { %4148 = shalt.err (!%p4145_p2)
}
  0x11   :  { %s4149_s28 = scalar_lea.vmem %s57_s22, 2048  ;;  %p4154_p4 = scmp.lt.s32.totalorder %s57_s22, %s57_s22 }
  0x12   :  { %p4150_p3 = scmp.ne.s32.totalorder %s57_s22, %s4149_s28  ;;  %p4155_p5 = scmp.lt.s32.totalorder %s4149_s28, %s4149_s28 }
  0x14   :  { %p4156_p6 = por %p4155_p5, %p4154_p4 }
  0x16   :  { %p4157_p7 = pnand %p4156_p6, %p4150_p3 }
  0x18   :  { %4160 = shalt.err (!%p4157_p7)
}
  0x19   :  { %s5022_s4 = smov 128   ;;  %s4281_s29 = smov 8  }
  0x1a   :  { %62 = dma.hbm_to_vmem [thread:$0]  %s5003_s6, 2048, %s57_s22, [#allocation6], %s5022_s4, %s5022_s4, %s4281_s29  }
  0x1b   :  { %s4282_s21 = smov [#allocation8]   ;;  %s4283_s23 = smov [#allocation2]  }
  0x1c   :  { %s96_s1 = sshll.u32 %s4282_s21, 4  ;;  %s42_s24 = sshll.u32 %s4283_s23, 4  ;;  %s97_s1 = int_to_ptr.vmem [resolvable:$true] %s96_s1  ;;  %s43_s24 = int_to_ptr.vmem [resolvable:$true] %s42_s24 }
  0x1d   :  { %s4161_s3 = scalar_lea.hbm %s5013_s16, 1024 }
  0x1e   :  { %p4162_p8 = scmp.ne.s32.totalorder %s5013_s16, %s4161_s3  ;;  %p4165_p9 = scmp.lt.u32.totalorder %s4161_s3, %s5013_s16 }
  0x20   :  { %p4167_p10 = pnand %p4165_p9, %p4162_p8 }
  0x22   :  { %4170 = shalt.err (!%p4167_p10)
}
  0x23   :  { %s4171_s6 = scalar_lea.vmem %s97_s1, 1024  ;;  %p4176_p12 = scmp.lt.s32.totalorder %s97_s1, %s97_s1 }
  0x24   :  { %p4172_p11 = scmp.ne.s32.totalorder %s97_s1, %s4171_s6  ;;  %p4177_p13 = scmp.lt.s32.totalorder %s4171_s6, %s4171_s6 }
  0x26   :  { %p4178_p0 = por %p4177_p13, %p4176_p12 }
  0x28   :  { %p4179_p1 = pnand %p4178_p0, %p4172_p11 }
  0x2a   :  { %4182 = shalt.err (!%p4179_p1)
}
  0x2b   :  { %102 = dma.hbm_to_vmem [thread:$0]  %s5013_s16, 1024, %s97_s1, [#allocation9], %s5022_s4, %s5022_s4, %s4281_s29  }
  0x2c   :  { %s5030_s21 = sld [smem:[#allocation20_spill]] }
  0x32   :  { %s4183_s23 = scalar_lea.hbm %s5030_s21, 4096 }
  0x33   :  { %p4184_p2 = scmp.ne.s32.totalorder %s5030_s21, %s4183_s23  ;;  %p4187_p3 = scmp.lt.u32.totalorder %s4183_s23, %s5030_s21 }
  0x35   :  { %p4189_p4 = pnand %p4187_p3, %p4184_p2 }
  0x37   :  { %4192 = shalt.err (!%p4189_p4)
}
  0x38   :  { %s4193_s27 = scalar_lea.vmem %s43_s24, 4096  ;;  %p4198_p6 = scmp.lt.s32.totalorder %s43_s24, %s43_s24 }
  0x39   :  { %p4194_p5 = scmp.ne.s32.totalorder %s43_s24, %s4193_s27  ;;  %p4199_p7 = scmp.lt.s32.totalorder %s4193_s27, %s4193_s27 }
  0x3b   :  { %p4200_p8 = por %p4199_p7, %p4198_p6 }
  0x3d   :  { %p4201_p9 = pnand %p4200_p8, %p4194_p5 }
  0x3f   :  { %4204 = shalt.err (!%p4201_p9)
}
  0x40   :  { %s4284_s16 = smov 256   ;;  %s4285_s1 = smov 16  }
  0x41   :  { %48 = dma.hbm_to_vmem [thread:$0]  %s5030_s21, 4096, %s43_s24, [#allocation3], %s4284_s16, %s4284_s16, %s4285_s1  }
  0x42   :  { %s4286_s22 = smov [#allocation7]   ;;  %s4287_s0 = smov [#allocation10]  }
  0x43   :  { %s78_s30 = sshll.u32 %s4286_s22, 4  ;;  %s110_s20 = sshll.u32 %s4287_s0, 4  ;;  %s79_s30 = int_to_ptr.vmem [resolvable:$true] %s78_s30  ;;  %s111_s20 = int_to_ptr.vmem [resolvable:$true] %s110_s20 }
  0x44   :  { %s4205_s25 = scalar_lea.hbm %s5009_s12, 8192 }
  0x45   :  { %p4206_p10 = scmp.ne.s32.totalorder %s5009_s12, %s4205_s25  ;;  %p4209_p11 = scmp.lt.u32.totalorder %s4205_s25, %s5009_s12 }
  0x47   :  { %p4211_p12 = pnand %p4209_p11, %p4206_p10 }
  0x49   :  { %4214 = shalt.err (!%p4211_p12)
}
  0x4a   :  { %s4215_s24 = scalar_lea.vmem %s79_s30, 8192  ;;  %p4220_p0 = scmp.lt.s32.totalorder %s79_s30, %s79_s30 }
  0x4b   :  { %p4216_p13 = scmp.ne.s32.totalorder %s79_s30, %s4215_s24  ;;  %p4221_p1 = scmp.lt.s32.totalorder %s4215_s24, %s4215_s24 }
  0x4d   :  { %p4222_p2 = por %p4221_p1, %p4220_p0 }
  0x4f   :  { %p4223_p3 = pnand %p4222_p2, %p4216_p13 }
  0x51   :  { %4226 = shalt.err (!%p4223_p3)
}
  0x52   :  { %s5031_s21 = smov 128   ;;  %s4227_s22 = scalar_lea.hbm %s5015_s18, 2048 }
  0x53   :  { %84 = dma.hbm_to_vmem [thread:$0]  %s5009_s12, 8192, %s79_s30, [#allocation6], %s5031_s21, %s5031_s21, %s4281_s29  }
  0x54   :  { %p4228_p4 = scmp.ne.s32.totalorder %s5015_s18, %s4227_s22  ;;  %p4231_p5 = scmp.lt.u32.totalorder %s4227_s22, %s5015_s18 }
  0x56   :  { %p4233_p6 = pnand %p4231_p5, %p4228_p4 }
  0x58   :  { %4236 = shalt.err (!%p4233_p6)
}
  0x59   :  { %s4237_s3 = scalar_lea.vmem %s111_s20, 2048  ;;  %p4242_p8 = scmp.lt.s32.totalorder %s111_s20, %s111_s20 }
  0x5a   :  { %p4238_p7 = scmp.ne.s32.totalorder %s111_s20, %s4237_s3  ;;  %p4243_p9 = scmp.lt.s32.totalorder %s4237_s3, %s4237_s3 }
  0x5c   :  { %p4244_p10 = por %p4243_p9, %p4242_p8 }
  0x5e   :  { %p4245_p11 = pnand %p4244_p10, %p4238_p7 }
  0x60   :  { %4248 = shalt.err (!%p4245_p11)
}
  0x61   :  { %116 = dma.hbm_to_vmem [thread:$0]  %s5015_s18, 2048, %s111_s20, [#allocation9], %s5031_s21, %s5031_s21, %s4281_s29  }
  0x62   :  { %4271 = dma.done.wait [#allocation3], 4096  }
  0x63   :  { %4272 = vsyncadd [#allocation3], 4294963200 }
  0x64   :  { %4273 = dma.done.wait [#allocation6], 10240  }
  0x65   :  { %4274 = vsyncadd [#allocation6], 4294957056 }
  0x66   :  { %4275 = dma.done.wait [#allocation9], 3072  }
  0x67   :  { %4276 = vsyncadd [#allocation9], 4294964224  ;;  %vm140_vm0 = vcmask 523264   ;;  %s5032_s24 = sld [smem:[#allocation16_spill]]  ;;  %v185_v14 = vld [vmem:[#allocation2 + $0x8] sm:$0xff]  ;;  %v187_v15 = vld [vmem:[#allocation2 + $0x18] sm:$0xff]  ;;  %v202_v55 = vlaneseq }
  0x68   :  { %v3672_v16 = vpack.c.bf16 %v187_v15, %v185_v14  ;;  %v184_v17 = vld [vmem:[#allocation2] sm:$0xff]  ;;  %v186_v18 = vld [vmem:[#allocation2 + $0x10] sm:$0xff]  ;;  %v189_v20 = vld [vmem:[#allocation2 + $0x28] sm:$0xff]  ;;  %v4288_v33 = vmov 0.0   ;;  %s5033_s20 = sld [smem:[#allocation18_spill]]  ;;  %s5034_s4 = sld [smem:[#allocation19_spill]] }
  0x69   :  { %v3674_v19 = vpack.c.bf16 %v186_v18, %v184_v17  ;;  %v191_v21 = vld [vmem:[#allocation2 + $0x38] sm:$0xff]  ;;  %v188_v23 = vld [vmem:[#allocation2 + $0x20] sm:$0xff]  ;;  %v190_v24 = vld [vmem:[#allocation2 + $0x30] sm:$0xff]  ;;  %282 = vmatprep.mubr.f32.mxu0 %v4288_v33  ;;  %v203_v56 = vshrl.u32 %v202_v55, 7  ;;  %vm303_vm1 = vcmask 130048   ;;  %s4289_s23 = smov 64  }
  0x6a   :  { %3673 = vmatprep.subr.bf16.mxu0 %v3672_v16  ;;  %v3676_v22 = vpack.c.bf16 %v191_v21, %v189_v20  ;;  %v3678_v25 = vpack.c.bf16 %v190_v24, %v188_v23  ;;  %v193_v26 = vld [vmem:[#allocation2 + $0x48] sm:$0xff]  ;;  %v195_v27 = vld [vmem:[#allocation2 + $0x58] sm:$0xff]  ;;  %v192_v28 = vld [vmem:[#allocation2 + $0x40] sm:$0xff]  ;;  %s4290_s2 = smov 112   ;;  %s4291_s25 = smov 32   ;;  %vm1120_vm3 = vcmask 261120  }
  0x6b   :  { %3675 = vmatpush1.bf16.msra.mxu0 %v3674_v19  ;;  %v3680_v29 = vpack.c.bf16 %v195_v27, %v193_v26  ;;  %v194_v30 = vld [vmem:[#allocation2 + $0x50] sm:$0xff]  ;;  %v197_v31 = vld [vmem:[#allocation2 + $0x68] sm:$0xff]  ;;  %v199_v32 = vld [vmem:[#allocation2 + $0x78] sm:$0xff]  ;;  %v4502_v57 = vsub.s32 0, %v203_v56  ;;  %v4508_v60 = vsub.s32 1, %v203_v56  ;;  %s4292_s3 = smov 96  }
  0x6c   :  { %3677 = vmatprep.subr.bf16.mxu0 %v3676_v22  ;;  %v3682_v34 = vpack.c.bf16 %v194_v30, %v192_v28  ;;  %v3684_v35 = vpack.c.bf16 %v199_v32, %v197_v31  ;;  %v196_v36 = vld [vmem:[#allocation2 + $0x60] sm:$0xff]  ;;  %v198_v37 = vld [vmem:[#allocation2 + $0x70] sm:$0xff]  ;;  %vm4533_vm2 = vmpackc.low %vm303_vm1, %vm303_vm1  ;;  %s5037_s26 = sld [smem:[#allocation17_spill]]  ;;  %s4293_s16 = smov 48   ;;  %vm1123_vm4 = vcmask 392192   ;;  %vm4296_vm5 = vmmov 0  }
  0x6d   :  { %v136_v0 = vld [vmem:[%s5032_s24] sm:$0xff]  ;;  %v137_v1 = vld [vmem:[%s5032_s24 + $0x8] sm:$0xff]  ;;  %v3686_v38 = vpack.c.bf16 %v198_v37, %v196_v36  ;;  %s4294_s28 = smov 80   ;;  %vm2978_vm6 = vcmask 1040384   ;;  %s4297_s29 = smov [#allocation11]   ;;  %vm3162_vm7 = vcmask 779264  }
  0x6e   :  { %v141_v2 = vsel %vm140_vm0, %v136_v0, 0.0  ;;  %v144_v3 = vsel %vm140_vm0, %v137_v1, 0.0  ;;  %v3181_v46 = vld [vmem:[%s5033_s20] ss:$0 sm:$0xff] }
  0x6f   :  { %142 = vadd.xlane.f32.xlu0 %v141_v2  ;;  %3679 = vmatpush1.bf16.msra.mxu0 %v3678_v25  ;;  %v3182_v48 = vld [vmem:[%s5034_s4] ss:$0 sm:$0xff] }
  0x70   :  { %3681 = vmatprep.subr.bf16.mxu0 %v3680_v29  ;;  %v200_v58 = vld [vmem:[%s5002_s5] sm:$0x3] }
  0x71   :  { %v205_v59 = vrot.slane %v200_v58, %v4502_v57 }
  0x72   :  { %v4546_v16 = vld [vmem:[%s5037_s26] sm:$0xff]  ;;  %v4551_v18 = vld [vmem:[%s5037_s26 + $0x8] sm:$0xff] }
  0x73   :  { %145 = vadd.xlane.f32.xlu0 %v144_v3  ;;  %3683 = vmatpush1.bf16.msra.mxu0 %v3682_v34 }
  0x74   :  { %3685 = vmatprep.subr.bf16.mxu0 %v3684_v35 }
  0x77   :  { %3687 = vmatpush1.bf16.msra.mxu0 %v3686_v38 }
  0xfc   :  { %v143_v4 = vpop.xlane.xlu0 %142 }
  0xfd   :  { %v148_v5 = vmul.f32 0.015625, %v143_v4 }
  0xff   :  { %v150_v6 = vsub.f32 %v136_v0, %v148_v5  ;;  %v209_v0 = vrot.slane %v200_v58, %v4508_v60 }
 0x100   :  { %v146_v7 = vpop.xlane.xlu0 %145 }
 0x101   :  { %v149_v8 = vmul.f32 0.015625, %v146_v7  ;;  %v152_v9 = vmul.f32 %v150_v6, %v150_v6 }
 0x103   :  { %v151_v10 = vsub.f32 %v137_v1, %v149_v8  ;;  %v154_v11 = vsel %vm140_vm0, %v152_v9, 0.0 }
 0x104   :  { %155 = vadd.xlane.f32.xlu1 %v154_v11 }
 0x105   :  { %v153_v12 = vmul.f32 %v151_v10, %v151_v10 }
 0x107   :  { %v157_v13 = vsel %vm140_vm0, %v153_v12, 0.0 }
 0x108   :  { %158 = vadd.xlane.f32.xlu1 %v157_v13 }
 0x191   :  { %v156_v39 = vpop.xlane.xlu1 %155 }
 0x192   :  { %v160_v40 = vmul.f32 0.015625, %v156_v39 }
 0x194   :  { %v162_v41 = vadd.f32 1e-12, %v160_v40 }
 0x195   :  { %v159_v42 = vpop.xlane.xlu1 %158 }
 0x196   :  { %4037 = vrsqrt.f32 %v162_v41  ;;  %v161_v43 = vmul.f32 0.015625, %v159_v42 }
 0x198   :  { %v163_v44 = vadd.f32 1e-12, %v161_v43 }
 0x19a   :  { %4039 = vrsqrt.f32 %v163_v44 }
 0x1a0   :  { %v4038_v45 = vpop.eup %4037 }
 0x1a1   :  { %v166_v47 = vmul.f32 %v4038_v45, %v150_v6 }
 0x1a3   :  { %v174_v49 = vmul.f32 %v3181_v46, %v166_v47 }
 0x1a4   :  { %v4040_v50 = vpop.eup %4039 }
 0x1a5   :  { %v4493_v51 = vadd.f32 %v3182_v48, %v174_v49  ;;  %v167_v52 = vmul.f32 %v4040_v50, %v151_v10 }
 0x1a7   :  { %3183 = vmatmul.mubr.msk.f32.vlgmr.msra.gmra.mrb[0].mxu0 %vm140_vm0, %v4493_v51  ;;  %v175_v53 = vmul.f32 %v3181_v46, %v167_v52 }
 0x1a8   :  { %288 = vmatprep.mubr.f32.mxu0 %v4288_v33 }
 0x1a9   :  { %v4498_v54 = vadd.f32 %v3182_v48, %v175_v53 }
 0x1ab   :  { %3184 = vmatmul.mubr.msk.f32.gmra.mrb[2].mxu0 %vm140_vm0, %v4498_v54 }
 0x27a   :  { %v284_v61 = vpop.f32.mrb[0].mxu0 }
 0x27b   :  { %v285_v62 = vadd.f32 %v284_v61, %v205_v59  ;;  %v286_v63 = vpop.f32.mrb[1].mxu0 }
 0x27c   :  { %v287_v5 = vadd.f32 %v286_v63, %v209_v0 }
 0x27d   :  { %v4511_v1 = vmul.f32 0.25, %v285_v62 }
 0x27e   :  { %v290_v2 = vpop.f32.mrb[2].mxu0 }
 0x27f   :  { %v291_v3 = vadd.f32 %v290_v2, %v205_v59  ;;  %v292_v4 = vpop.f32.mrb[3].mxu0  ;;  %3472 = vmatprep.mubr.msk.f32.mxu0 %vm303_vm1, %v4511_v1 }
 0x280   :  { %v293_v6 = vadd.f32 %v292_v4, %v209_v0 }
 0x281   :  { %v4515_v7 = vpack.i.bf16 %v291_v3, %v285_v62  ;;  %v4525_v10 = vmul.f32 0.25, %v291_v3 }
 0x282   :  { %v3694_v8 = vpack.c.bf16 %v293_v6, %v287_v5  ;;  %v4517_v9 = vpack.i.bf16 %v293_v6, %v287_v5 }
 0x283   :  { %3968 = vrot.lane.b32.xlu0 %v4515_v7, %s4289_s23 }
 0x284   :  { %3695 = vmatprep.subr.bf16.mxu1 %v3694_v8 }
 0x285   :  { %3697 = vmatpush3.bf16.msra.mxu1 %v3694_v8 }
 0x287   :  { %492 = vrot.lane.b32.xlu0 %v4511_v1, %s4290_s2 }
 0x28b   :  { %3978 = vrot.lane.b32.xlu0 %v4515_v7, %s4291_s25 }
 0x28f   :  { %494 = vrot.lane.b32.xlu0 %v4525_v10, %s4290_s2 }
 0x293   :  { %696 = vrot.lane.b32.xlu0 %v4525_v10, %s4292_s3 }
 0x2f5   :  { %v3969_v11 = vpop.permute.xlu0 %3968 }
 0x2f6   :  { %v3971_v12 = vunpack.i.h.bf16 %v3969_v11  ;;  %v3970_v13 = vunpack.i.l.bf16 %v3969_v11 }
 0x2f8   :  { %v3688_v15 = vpack.c.bf16 %v3971_v12, %v3970_v13 }
 0x2f9   :  { %v493_v37 = vpop.permute.xlu0 %492 }
 0x2fa   :  { %3690 = vmatprep.subr.msk.bf16.mxu0 %vm4533_vm2, %v3688_v15 }
 0x2fb   :  { %3693 = vmatpush3.bf16.xpose.msk.msra.mxu0 %vm4533_vm2, %v3688_v15 }
 0x2fd   :  { %v3979_v42 = vpop.permute.xlu0 %3978 }
 0x2fe   :  { %v3981_v45 = vunpack.i.h.bf16 %v3979_v42  ;;  %v3980_v46 = vunpack.i.l.bf16 %v3979_v42 }
 0x300   :  { %v3708_v49 = vpack.c.bf16 %v3981_v45, %v3980_v46 }
 0x301   :  { %v495_v50 = vpop.permute.xlu0 %494 }
 0x302   :  { %3473 = vmatmul.mubr.msk.f32.vlgmr.msra.gmra.mrb[4].mxu0 %vm303_vm1, %v4525_v10 }
 0x305   :  { %v697_v53 = vpop.permute.xlu0 %696 }
 0x3d5   :  { %v3474_v17 = vpop.f32.mrb[4].mxu0 }
 0x3d6   :  { %v380_v19 = vpop.f32.mrb[5].mxu0  ;;  %v386_v21 = vadd.f32 %v3474_v17, %v4551_v18 }
 0x3d7   :  { %v381_v20 = vadd.f32 %v380_v19, %v4546_v16 }
 0x3d8   :  { %v392_v23 = vsel %vm303_vm1, %v386_v21, -inf }
 0x3d9   :  { %v389_v22 = vsel %vm303_vm1, %v381_v20, -inf }
 0x3da   :  { %390 = vmax.xlane.f32.xlu1 %v389_v22 }
 0x3de   :  { %393 = vmax.xlane.f32.xlu1 %v392_v23 }
 0x467   :  { %v391_v24 = vpop.xlane.xlu1 %390 }
 0x468   :  { %v395_v25 = vsub.f32 %v381_v20, %v391_v24 }
 0x46a   :  { %v397_v28 = vmul.f32 1.442695, %v395_v25 }
 0x46b   :  { %v394_v26 = vpop.xlane.xlu1 %393 }
 0x46c   :  { %v396_v27 = vsub.f32 %v386_v21, %v394_v26 }
 0x46e   :  { %v399_v29 = vmul.f32 1.442695, %v396_v27 }
 0x470   :  { %4041 = vpow2.f32 %v399_v29 }
 0x471   :  { %4043 = vpow2.f32 %v397_v28 }
 0x47a   :  { %v4042_v30 = vpop.eup %4041 }
 0x47b   :  { %v404_v31 = vsel %vm303_vm1, %v4042_v30, 0.0  ;;  %v4044_v32 = vpop.eup %4043 }
 0x47c   :  { %405 = vadd.xlane.f32.xlu1 %v404_v31  ;;  %v401_v34 = vsel %vm303_vm1, %v4044_v32, 0.0 }
 0x480   :  { %402 = vadd.xlane.f32.xlu1 %v401_v34 }
 0x491   :  { %3973 = vrot.lane.b32.xlu1 %v4515_v7, %s4293_s16 }
 0x495   :  { %694 = vrot.lane.b32.xlu1 %v4511_v1, %s4292_s3 }
 0x509   :  { %v406_v35 = vpop.xlane.xlu1 %405 }
 0x50a   :  { %4045 = vrcp.f32 %v406_v35 }
 0x50d   :  { %v403_v36 = vpop.xlane.xlu1 %402 }
 0x50e   :  { %4047 = vrcp.f32 %v403_v36 }
 0x511   :  { %v3974_v38 = vpop.permute.xlu1 %3973 }
 0x512   :  { %v3976_v39 = vunpack.i.h.bf16 %v3974_v38  ;;  %v3975_v40 = vunpack.i.l.bf16 %v3974_v38 }
 0x514   :  { %v3698_v41 = vpack.c.bf16 %v3976_v39, %v3975_v40  ;;  %v4046_v43 = vpop.eup %4045 }
 0x515   :  { %v410_v48 = vmul.f32 %v4046_v43, %v4042_v30  ;;  %v695_v52 = vpop.permute.xlu1 %694 }
 0x516   :  { %3700 = vmatprep.subr.msk.bf16.mxu1 %vm4533_vm2, %v3698_v41 }
 0x518   :  { %v4048_v44 = vpop.eup %4047 }
 0x519   :  { %v409_v47 = vmul.f32 %v4048_v44, %v4044_v32 }
 0x51b   :  { %3479 = vmatprep.mubr.msk.f32.mxu1 %vm303_vm1, %v409_v47 }
 0x51c   :  { %3480 = vmatmul.mubr.msk.f32.vlgmr.msra.gmra.mrb[0].mxu1 %vm303_vm1, %v410_v48 }
 0x51d   :  { %3703 = vmatpush3.bf16.xpose.msk.msra.mxu1 %vm4533_vm2, %v3698_v41  ;;  %3486 = vmatprep.mubr.msk.f32.mxu1 %vm303_vm1, %v493_v37 }
 0x51e   :  { %3710 = vmatprep.subr.msk.bf16.mxu1 %vm4533_vm2, %v3708_v49 }
 0x524   :  { %3487 = vmatmul.mubr.msk.f32.vlgmr.msra.gmra.mrb[2].mxu1 %vm303_vm1, %v495_v50 }
 0x525   :  { %3713 = vmatpush3.bf16.xpose.msk.msra.mxu1 %vm4533_vm2, %v3708_v49  ;;  %3500 = vmatprep.mubr.msk.f32.mxu1 %vm303_vm1, %v695_v52 }
 0x52c   :  { %3501 = vmatmul.mubr.msk.f32.vlgmr.msra.gmra.mrb[4].mxu1 %vm303_vm1, %v697_v53 }
 0x5ef   :  { %v4577_v55 = vpop.f32.mrb[0].mxu1 }
 0x5f0   :  { %v4579_v56 = vpop.f32.mrb[1].mxu1 }
 0x5f7   :  { %v3488_v58 = vpop.f32.mrb[2].mxu1 }
 0x5f8   :  { %v580_v59 = vadd.f32 %v3488_v58, %v4551_v18  ;;  %v574_v61 = vpop.f32.mrb[3].mxu1 }
 0x5f9   :  { %v575_v62 = vadd.f32 %v574_v61, %v4546_v16 }
 0x5fa   :  { %v586_v63 = vsel %vm303_vm1, %v580_v59, -inf }
 0x5fb   :  { %587 = vmax.xlane.f32.xlu0 %v586_v63  ;;  %v583_v0 = vsel %vm303_vm1, %v575_v62, -inf }
 0x5fc   :  { %584 = vmax.xlane.f32.xlu1 %v583_v0 }
 0x5ff   :  { %v3502_v2 = vpop.f32.mrb[4].mxu1 }
 0x600   :  { %v776_v3 = vpop.f32.mrb[5].mxu1  ;;  %v782_v5 = vadd.f32 %v3502_v2, %v4551_v18 }
 0x601   :  { %v777_v4 = vadd.f32 %v776_v3, %v4546_v16 }
 0x602   :  { %v788_v8 = vsel %vm303_vm1, %v782_v5, -inf }
 0x603   :  { %v785_v6 = vsel %vm303_vm1, %v777_v4, -inf }
 0x604   :  { %786 = vmax.xlane.f32.xlu0 %v785_v6 }
 0x608   :  { %789 = vmax.xlane.f32.xlu0 %v788_v8 }
 0x60d   :  { %3983 = vrot.lane.b32.xlu1 %v4517_v9, %s4290_s2 }
 0x688   :  { %v588_v11 = vpop.xlane.xlu0 %587 }
 0x689   :  { %v590_v12 = vsub.f32 %v580_v59, %v588_v11  ;;  %v585_v13 = vpop.xlane.xlu1 %584 }
 0x68a   :  { %v589_v15 = vsub.f32 %v575_v62, %v585_v13 }
 0x68b   :  { %v593_v17 = vmul.f32 1.442695, %v590_v12 }
 0x68c   :  { %v591_v19 = vmul.f32 1.442695, %v589_v15 }
 0x68d   :  { %4049 = vpow2.f32 %v593_v17  ;;  %v3984_v20 = vpop.permute.xlu1 %3983 }
 0x68e   :  { %4051 = vpow2.f32 %v591_v19  ;;  %v3986_v21 = vunpack.i.h.bf16 %v3984_v20  ;;  %v3985_v22 = vunpack.i.l.bf16 %v3984_v20 }
 0x690   :  { %v3704_v23 = vpack.c.bf16 %v3986_v21, %v3985_v22 }
 0x691   :  { %v787_v24 = vpop.xlane.xlu0 %786 }
 0x692   :  { %3705 = vmatprep.subr.bf16.mxu0 %v3704_v23  ;;  %v791_v35 = vsub.f32 %v777_v4, %v787_v24 }
 0x693   :  { %3707 = vmatpush3.bf16.msra.mxu0 %v3704_v23 }
 0x694   :  { %v793_v36 = vmul.f32 1.442695, %v791_v35 }
 0x695   :  { %v790_v25 = vpop.xlane.xlu0 %789 }
 0x696   :  { %v792_v26 = vsub.f32 %v782_v5, %v790_v25 }
 0x697   :  { %v4050_v27 = vpop.eup %4049 }
 0x698   :  { %v4052_v28 = vpop.eup %4051  ;;  %v795_v29 = vmul.f32 1.442695, %v792_v26  ;;  %v598_v30 = vsel %vm303_vm1, %v4050_v27, 0.0 }
 0x699   :  { %599 = vadd.xlane.f32.xlu0 %v598_v30  ;;  %v595_v31 = vsel %vm303_vm1, %v4052_v28, 0.0 }
 0x69a   :  { %4053 = vpow2.f32 %v795_v29  ;;  %596 = vadd.xlane.f32.xlu1 %v595_v31 }
 0x69b   :  { %4055 = vpow2.f32 %v793_v36  ;;  %v1127_v36 = vld [vmem:[#allocation5 + $0x8] sm:$0xff] }
 0x6a4   :  { %v4054_v32 = vpop.eup %4053 }
 0x6a5   :  { %v800_v34 = vsel %vm303_vm1, %v4054_v32, 0.0  ;;  %v4056_v37 = vpop.eup %4055 }
 0x6a6   :  { %801 = vadd.xlane.f32.xlu0 %v800_v34  ;;  %v797_v38 = vsel %vm303_vm1, %v4056_v37, 0.0 }
 0x6ab   :  { %3993 = vrot.lane.b32.xlu1 %v4515_v7, %s4285_s1 }
 0x6af   :  { %894 = vrot.lane.b32.xlu1 %v4511_v1, %s4294_s28 }
 0x6bc   :  { %3988 = vrot.lane.b32.xlu0 %v4517_v9, %s4292_s3 }
 0x6d3   :  { %798 = vadd.xlane.f32.xlu1 %v797_v38 }
 0x6e4   :  { %896 = vrot.lane.b32.xlu1 %v4525_v10, %s4294_s28 }
 0x726   :  { %v600_v39 = vpop.xlane.xlu0 %599 }
 0x727   :  { %4057 = vrcp.f32 %v600_v39  ;;  %v597_v7 = vpop.xlane.xlu1 %596  ;;  %v1129_v39 = vld [vmem:[#allocation5 + $0x18] sm:$0xff] }
 0x728   :  { %4059 = vrcp.f32 %v597_v7 }
 0x72b   :  { %v3994_v44 = vpop.permute.xlu1 %3993 }
 0x72c   :  { %v3996_v46 = vunpack.i.h.bf16 %v3994_v44  ;;  %v3995_v47 = vunpack.i.l.bf16 %v3994_v44 }
 0x72e   :  { %v3718_v50 = vpack.c.bf16 %v3996_v46, %v3995_v47 }
 0x72f   :  { %v895_v52 = vpop.permute.xlu1 %894 }
 0x731   :  { %v4058_v40 = vpop.eup %4057 }
 0x732   :  { %v4060_v41 = vpop.eup %4059  ;;  %v604_v43 = vmul.f32 %v4058_v40, %v4050_v27  ;;  %v1130_v40 = vld [vmem:[#allocation5 + $0x20] sm:$0xff] }
 0x733   :  { %v802_v1 = vpop.xlane.xlu0 %801  ;;  %v603_v42 = vmul.f32 %v4060_v41, %v4052_v28  ;;  %v1131_v41 = vld [vmem:[#allocation5 + $0x28] sm:$0xff] }
 0x734   :  { %4061 = vrcp.f32 %v802_v1  ;;  %v3736_v1 = vpack.c.bf16 %v1131_v41, %v1130_v40  ;;  %v1280_v40 = vld [vmem:[%s5007_s10 + $0x60] sm:$0xff]  ;;  %v1282_v41 = vld [vmem:[%s5007_s10 + $0x70] sm:$0xff] }
 0x735   :  { %3493 = vmatprep.mubr.msk.f32.mxu0 %vm303_vm1, %v603_v42  ;;  %v1132_v42 = vld [vmem:[#allocation5 + $0x30] sm:$0xff] }
 0x736   :  { %3494 = vmatmul.mubr.msk.f32.vlgmr.msra.gmra.mrb[6].mxu0 %vm303_vm1, %v604_v43  ;;  %v1133_v43 = vld [vmem:[#allocation5 + $0x38] sm:$0xff] }
 0x737   :  { %v3989_v45 = vpop.permute.xlu0 %3988  ;;  %v3740_v44 = vpack.c.bf16 %v1133_v43, %v1132_v42 }
 0x738   :  { %v3991_v48 = vunpack.i.h.bf16 %v3989_v45  ;;  %v3990_v49 = vunpack.i.l.bf16 %v3989_v45 }
 0x73a   :  { %v3714_v10 = vpack.c.bf16 %v3991_v48, %v3990_v49 }
 0x73c   :  { %3715 = vmatprep.subr.bf16.mxu0 %v3714_v10 }
 0x73d   :  { %3717 = vmatpush3.bf16.msra.mxu0 %v3714_v10 }
 0x73e   :  { %3720 = vmatprep.subr.msk.bf16.mxu0 %vm4533_vm2, %v3718_v50  ;;  %v4062_v58 = vpop.eup %4061 }
 0x73f   :  { %v806_v62 = vmul.f32 %v4062_v58, %v4054_v32 }
 0x760   :  { %v799_v53 = vpop.xlane.xlu1 %798 }
 0x761   :  { %4063 = vrcp.f32 %v799_v53 }
 0x764   :  { %v897_v63 = vpop.permute.xlu1 %896 }
 0x76b   :  { %v4064_v59 = vpop.eup %4063 }
 0x76c   :  { %v805_v61 = vmul.f32 %v4064_v59, %v4056_v37  ;;  %v1128_v37 = vld [vmem:[#allocation5 + $0x10] sm:$0xff] }
 0x76d   :  { %v3732_v7 = vpack.c.bf16 %v1129_v39, %v1128_v37  ;;  %v1283_v39 = vld [vmem:[%s5007_s10 + $0x78] sm:$0xff] }
 0x76e   :  { %3507 = vmatprep.mubr.msk.f32.mxu0 %vm303_vm1, %v805_v61 }
 0x76f   :  { %3508 = vmatmul.mubr.msk.f32.vlgmr.msra.gmra.mrb[8].mxu0 %vm303_vm1, %v806_v62 }
 0x770   :  { %3723 = vmatpush3.bf16.xpose.msk.msra.mxu0 %vm4533_vm2, %v3718_v50  ;;  %3514 = vmatprep.mubr.msk.f32.mxu0 %vm303_vm1, %v895_v52 }
 0x777   :  { %3515 = vmatmul.mubr.msk.f32.vlgmr.msra.gmra.mrb[10].mxu0 %vm303_vm1, %v897_v63 }
 0x778   :  { %1366 = vmatprep.mubr.f32.mxu0 %v4288_v33 }
 0x809   :  { %v3495_v0 = vpop.f32.mrb[6].mxu0 }
 0x80a   :  { %v685_v2 = vpop.f32.mrb[7].mxu0 }
 0x842   :  { %v3509_v3 = vpop.f32.mrb[8].mxu0 }
 0x843   :  { %v885_v4 = vpop.f32.mrb[9].mxu0 }
 0x84a   :  { %v3516_v5 = vpop.f32.mrb[10].mxu0 }
 0x84b   :  { %v982_v6 = vadd.f32 %v3516_v5, %v4551_v18  ;;  %v976_v8 = vpop.f32.mrb[11].mxu0 }
 0x84c   :  { %v977_v11 = vadd.f32 %v976_v8, %v4546_v16 }
 0x84d   :  { %v988_v12 = vsel %vm303_vm1, %v982_v6, -inf }
 0x84e   :  { %989 = vmax.xlane.f32.xlu1 %v988_v12  ;;  %v985_v13 = vsel %vm303_vm1, %v977_v11, -inf }
 0x84f   :  { %986 = vmax.xlane.f32.xlu0 %v985_v13 }
 0x85f   :  { %1096 = vrot.lane.b32.xlu1 %v685_v2, %s4285_s1 }
 0x863   :  { %1098 = vrot.lane.b32.xlu1 %v3495_v0, %s4285_s1 }
 0x867   :  { %1104 = vrot.lane.b32.xlu1 %v885_v4, %s4291_s25 }
 0x8db   :  { %v990_v15 = vpop.xlane.xlu1 %989 }
 0x8dc   :  { %v992_v17 = vsub.f32 %v982_v6, %v990_v15  ;;  %v987_v19 = vpop.xlane.xlu0 %986 }
 0x8dd   :  { %v991_v20 = vsub.f32 %v977_v11, %v987_v19 }
 0x8de   :  { %v995_v18 = vmul.f32 1.442695, %v992_v17 }
 0x8df   :  { %v993_v21 = vmul.f32 1.442695, %v991_v20  ;;  %v1097_v47 = vpop.permute.xlu1 %1096 }
 0x8e0   :  { %4065 = vpow2.f32 %v995_v18  ;;  %v1118_v50 = vsel %vm303_vm1, %v4579_v56, %v1097_v47  ;;  %v3209_v56 = vld [vmem:[%s5004_s7] ss:$0 sm:$0xff] }
 0x8e1   :  { %4067 = vpow2.f32 %v993_v21 }
 0x8e3   :  { %v1099_v48 = vpop.permute.xlu1 %1098 }
 0x8e4   :  { %v1119_v53 = vsel %vm303_vm1, %v4577_v55, %v1099_v48 }
 0x8e7   :  { %v1105_v10 = vpop.permute.xlu1 %1104 }
 0x8e8   :  { %v1121_v58 = vsel %vm1120_vm3, %v1118_v50, %v1105_v10  ;;  %v3213_v50 = vld [vmem:[%s5006_s9] ss:$0 sm:$0xff] }
 0x8ea   :  { %v4066_v16 = vpop.eup %4065 }
 0x8eb   :  { %v1000_v22 = vsel %vm303_vm1, %v4066_v16, 0.0  ;;  %v4068_v23 = vpop.eup %4067 }
 0x8ec   :  { %1001 = vadd.xlane.f32.xlu0 %v1000_v22  ;;  %v997_v24 = vsel %vm303_vm1, %v4068_v23, 0.0 }
 0x8f0   :  { %998 = vadd.xlane.f32.xlu0 %v997_v24  ;;  %v1270_v24 = vld [vmem:[%s5007_s10 + $0x10] sm:$0xff] }
 0x906   :  { %3998 = vrot.lane.b32.xlu0 %v4517_v9, %s4294_s28  ;;  %v1126_v9 = vld [vmem:[#allocation5] sm:$0xff] }
 0x907   :  { %v3728_v38 = vpack.c.bf16 %v1127_v36, %v1126_v9  ;;  %v1276_v9 = vld [vmem:[%s5007_s10 + $0x40] sm:$0xff]  ;;  %v1278_v36 = vld [vmem:[%s5007_s10 + $0x50] sm:$0xff] }
 0x908   :  { %v3754_v37 = vpack.c.bf16 %v1278_v36, %v1276_v9  ;;  %v1443_v9 = vld [vmem:[#allocation7 + $0xe0] sm:$0xff]  ;;  %v1444_v36 = vld [vmem:[#allocation7 + $0xe8] sm:$0xff] }
 0x90a   :  { %1106 = vrot.lane.b32.xlu0 %v3509_v3, %s4291_s25 }
 0x979   :  { %v1002_v25 = vpop.xlane.xlu0 %1001 }
 0x97a   :  { %4069 = vrcp.f32 %v1002_v25 }
 0x97d   :  { %v999_v26 = vpop.xlane.xlu0 %998 }
 0x97e   :  { %4071 = vrcp.f32 %v999_v26  ;;  %v1273_v26 = vld [vmem:[%s5007_s10 + $0x28] sm:$0xff] }
 0x981   :  { %v3999_v27 = vpop.permute.xlu0 %3998 }
 0x982   :  { %v4001_v28 = vunpack.i.h.bf16 %v3999_v27  ;;  %v4000_v29 = vunpack.i.l.bf16 %v3999_v27  ;;  %v1275_v27 = vld [vmem:[%s5007_s10 + $0x38] sm:$0xff] }
 0x984   :  { %v3724_v30 = vpack.c.bf16 %v4001_v28, %v4000_v29  ;;  %v4070_v31 = vpop.eup %4069  ;;  %v3748_v28 = vpack.c.bf16 %v1275_v27, %v1273_v26  ;;  %v1272_v29 = vld [vmem:[%s5007_s10 + $0x20] sm:$0xff] }
 0x985   :  { %v1006_v35 = vmul.f32 %v4070_v31, %v4066_v16  ;;  %v1107_v49 = vpop.permute.xlu0 %1106  ;;  %v1271_v16 = vld [vmem:[%s5007_s10 + $0x18] sm:$0xff]  ;;  %v1423_v27 = vld [vmem:[#allocation7 + $0x40] sm:$0xff] }
 0x986   :  { %3725 = vmatprep.subr.bf16.mxu1 %v3724_v30  ;;  %v1122_v61 = vsel %vm1120_vm3, %v1119_v53, %v1107_v49  ;;  %v3212_v49 = vld [vmem:[%s5005_s8] ss:$0 sm:$0xff] }
 0x987   :  { %3727 = vmatpush3.bf16.msra.mxu1 %v3724_v30  ;;  %v1274_v30 = vld [vmem:[%s5007_s10 + $0x30] sm:$0xff] }
 0x988   :  { %v4072_v32 = vpop.eup %4071  ;;  %3729 = vmatprep.subr.bf16.mxu1 %v3728_v38  ;;  %v3750_v31 = vpack.c.bf16 %v1274_v30, %v1272_v29  ;;  %v1441_v30 = vld [vmem:[#allocation7 + $0xd0] sm:$0xff] }
 0x989   :  { %v1005_v34 = vmul.f32 %v4072_v32, %v4068_v23  ;;  %v1268_v23 = vld [vmem:[%s5007_s10] sm:$0xff]  ;;  %v1277_v32 = vld [vmem:[%s5007_s10 + $0x48] sm:$0xff] }
 0x98a   :  { %v3746_v25 = vpack.c.bf16 %v1270_v24, %v1268_v23  ;;  %v1439_v24 = vld [vmem:[#allocation7 + $0xc0] sm:$0xff] }
 0x98b   :  { %3521 = vmatprep.mubr.msk.f32.mxu1 %vm303_vm1, %v1005_v34  ;;  %v1279_v34 = vld [vmem:[%s5007_s10 + $0x58] sm:$0xff] }
 0x98c   :  { %3522 = vmatmul.mubr.msk.f32.vlgmr.msra.gmra.mrb[6].mxu1 %vm303_vm1, %v1006_v35  ;;  %v3752_v35 = vpack.c.bf16 %v1279_v34, %v1277_v32  ;;  %v1425_v32 = vld [vmem:[#allocation7 + $0x50] sm:$0xff] }
 0x98d   :  { %3731 = vmatpush3.bf16.msra.mxu1 %v3728_v38  ;;  %v1281_v38 = vld [vmem:[%s5007_s10 + $0x68] sm:$0xff] }
 0x98e   :  { %3733 = vmatprep.subr.bf16.mxu1 %v3732_v7 }
 0x991   :  { %3735 = vmatpush3.bf16.msra.mxu1 %v3732_v7  ;;  %v3756_v7 = vpack.c.bf16 %v1283_v39, %v1281_v38  ;;  %v3784_v38 = vpack.c.bf16 %v1444_v36, %v1443_v9  ;;  %v1427_v39 = vld [vmem:[#allocation7 + $0x60] sm:$0xff] }
 0x992   :  { %3737 = vmatprep.subr.bf16.mxu1 %v3736_v1 }
 0x995   :  { %3739 = vmatpush3.bf16.msra.mxu1 %v3736_v1  ;;  %v3758_v1 = vpack.c.bf16 %v1282_v41, %v1280_v40  ;;  %v1445_v40 = vld [vmem:[#allocation7 + $0xf0] sm:$0xff]  ;;  %v1446_v41 = vld [vmem:[#allocation7 + $0xf8] sm:$0xff] }
 0x996   :  { %3741 = vmatprep.subr.bf16.mxu1 %v3740_v44 }
 0x999   :  { %3743 = vmatpush3.bf16.msra.mxu1 %v3740_v44 }
 0xa5f   :  { %v3523_v45 = vpop.f32.mrb[6].mxu1 }
 0xa60   :  { %1114 = vrot.lane.b32.xlu0 %v3523_v45, %s4293_s16  ;;  %v1085_v46 = vpop.f32.mrb[7].mxu1 }
 0xa61   :  { %1112 = vrot.lane.b32.xlu1 %v1085_v46, %s4293_s16 }
 0xad2   :  { %v1115_v52 = vpop.permute.xlu0 %1114 }
 0xad3   :  { %v1113_v59 = vpop.permute.xlu1 %1112  ;;  %v1125_v63 = vsel %vm1123_vm4, %v1122_v61, %v1115_v52 }
 0xad4   :  { %v1124_v62 = vsel %vm1123_vm4, %v1121_v58, %v1113_v59 }
 0xad5   :  { %3540 = vmatprep.mubr.msk.f32.mxu1 %vm140_vm0, %v1124_v62 }
 0xad6   :  { %3541 = vmatmul.mubr.msk.f32.vlgmr.msra.gmra.mrb[8].mxu1 %vm140_vm0, %v1125_v63  ;;  %v1431_v63 = vld [vmem:[#allocation7 + $0x80] sm:$0xff] }
 0xba9   :  { %v3542_v0 = vpop.f32.mrb[8].mxu1 }
 0xbaa   :  { %v1219_v2 = vadd.f32 %v3542_v0, %v3209_v56  ;;  %v1213_v55 = vpop.f32.mrb[9].mxu1 }
 0xbab   :  { %v1214_v3 = vadd.f32 %v3209_v56, %v1213_v55  ;;  %v1432_v56 = vld [vmem:[#allocation7 + $0x88] sm:$0xff] }
 0xbac   :  { %v1223_v4 = vadd.f32 %v1219_v2, %v4498_v54  ;;  %v3760_v0 = vpack.c.bf16 %v1432_v56, %v1431_v63  ;;  %v1415_v2 = vld [vmem:[#allocation7] sm:$0xff]  ;;  %v1416_v55 = vld [vmem:[#allocation7 + $0x8] sm:$0xff] }
 0xbad   :  { %v1222_v5 = vadd.f32 %v1214_v3, %v4493_v51  ;;  %v1269_v51 = vld [vmem:[%s5007_s10 + $0x8] sm:$0xff]  ;;  %v3762_v3 = vpack.c.bf16 %v1416_v55, %v1415_v2 }
 0xbae   :  { %v1229_v6 = vsel %vm140_vm0, %v1223_v4, 0.0  ;;  %v3744_v22 = vpack.c.bf16 %v1271_v16, %v1269_v51  ;;  %3761 = vmatprep.subr.bf16.mxu1 %v3760_v0  ;;  %v1421_v16 = vld [vmem:[#allocation7 + $0x30] sm:$0xff] }
 0xbaf   :  { %1230 = vadd.xlane.f32.xlu0 %v1229_v6  ;;  %v1226_v8 = vsel %vm140_vm0, %v1222_v5, 0.0  ;;  %3763 = vmatpush3.bf16.msra.mxu1 %v3762_v3 }
 0xbb0   :  { %1227 = vadd.xlane.f32.xlu1 %v1226_v8  ;;  %3745 = vmatprep.subr.bf16.mxu0 %v3744_v22  ;;  %v1417_v8 = vld [vmem:[#allocation7 + $0x10] sm:$0xff]  ;;  %v1422_v22 = vld [vmem:[#allocation7 + $0x38] sm:$0xff] }
 0xbb1   :  { %3747 = vmatpush1.bf16.msra.mxu0 %v3746_v25  ;;  %v3774_v23 = vpack.c.bf16 %v1422_v22, %v1421_v16  ;;  %v1440_v25 = vld [vmem:[#allocation7 + $0xc8] sm:$0xff] }
 0xbb2   :  { %3749 = vmatprep.subr.bf16.mxu0 %v3748_v28  ;;  %v3776_v26 = vpack.c.bf16 %v1440_v25, %v1439_v24  ;;  %v1424_v28 = vld [vmem:[#allocation7 + $0x48] sm:$0xff] }
 0xbb3   :  { %v3778_v29 = vpack.c.bf16 %v1424_v28, %v1423_v27 }
 0xbb5   :  { %3751 = vmatpush1.bf16.msra.mxu0 %v3750_v31  ;;  %v1442_v31 = vld [vmem:[#allocation7 + $0xd8] sm:$0xff] }
 0xbb6   :  { %3753 = vmatprep.subr.bf16.mxu0 %v3752_v35  ;;  %v3780_v34 = vpack.c.bf16 %v1442_v31, %v1441_v30  ;;  %v1426_v35 = vld [vmem:[#allocation7 + $0x58] sm:$0xff] }
 0xbb9   :  { %3755 = vmatpush1.bf16.msra.mxu0 %v3754_v37  ;;  %v3782_v37 = vpack.c.bf16 %v1426_v35, %v1425_v32 }
 0xbba   :  { %3757 = vmatprep.subr.bf16.mxu0 %v3756_v7  ;;  %v1428_v7 = vld [vmem:[#allocation7 + $0x68] sm:$0xff] }
 0xbbd   :  { %3759 = vmatpush1.bf16.msra.mxu0 %v3758_v1  ;;  %v3786_v1 = vpack.c.bf16 %v1428_v7, %v1427_v39 }
 0xc3c   :  { %v1231_v11 = vpop.xlane.xlu0 %1230 }
 0xc3d   :  { %v1233_v12 = vmul.f32 0.015625, %v1231_v11  ;;  %v1228_v13 = vpop.xlane.xlu1 %1227  ;;  %v1418_v11 = vld [vmem:[#allocation7 + $0x18] sm:$0xff] }
 0xc3e   :  { %v1232_v15 = vmul.f32 0.015625, %v1228_v13  ;;  %v1435_v13 = vld [vmem:[#allocation7 + $0xa0] sm:$0xff] }
 0xc3f   :  { %v1235_v17 = vsub.f32 %v1223_v4, %v1233_v12  ;;  %v1433_v4 = vld [vmem:[#allocation7 + $0x90] sm:$0xff]  ;;  %v3766_v12 = vpack.c.bf16 %v1418_v11, %v1417_v8 }
 0xc40   :  { %v1234_v19 = vsub.f32 %v1222_v5, %v1232_v15  ;;  %v1434_v5 = vld [vmem:[#allocation7 + $0x98] sm:$0xff]  ;;  %v1436_v15 = vld [vmem:[#allocation7 + $0xa8] sm:$0xff] }
 0xc41   :  { %v1237_v21 = vmul.f32 %v1235_v17, %v1235_v17  ;;  %v3764_v6 = vpack.c.bf16 %v1434_v5, %v1433_v4 }
 0xc42   :  { %v1236_v20 = vmul.f32 %v1234_v19, %v1234_v19 }
 0xc43   :  { %v1241_v54 = vsel %vm140_vm0, %v1237_v21, 0.0  ;;  %3765 = vmatprep.subr.bf16.mxu1 %v3764_v6  ;;  %v1437_v21 = vld [vmem:[#allocation7 + $0xb0] sm:$0xff] }
 0xc44   :  { %v1238_v18 = vsel %vm140_vm0, %v1236_v20, 0.0  ;;  %3767 = vmatpush3.bf16.msra.mxu1 %v3766_v12  ;;  %v1420_v20 = vld [vmem:[#allocation7 + $0x28] sm:$0xff] }
 0xc45   :  { %1239 = vadd.xlane.f32.xlu0 %v1238_v18 }
 0xc49   :  { %1242 = vadd.xlane.f32.xlu0 %v1241_v54  ;;  %v1438_v54 = vld [vmem:[#allocation7 + $0xb8] sm:$0xff] }
 0xc4a   :  { %v3772_v51 = vpack.c.bf16 %v1438_v54, %v1437_v21 }
 0xcd2   :  { %v1240_v42 = vpop.xlane.xlu0 %1239 }
 0xcd3   :  { %v1244_v43 = vmul.f32 0.015625, %v1240_v42  ;;  %v3788_v42 = vpack.c.bf16 %v1446_v41, %v1445_v40 }
 0xcd5   :  { %v1246_v44 = vadd.f32 1e-12, %v1244_v43  ;;  %v1429_v43 = vld [vmem:[#allocation7 + $0x70] sm:$0xff] }
 0xcd6   :  { %v1243_v45 = vpop.xlane.xlu0 %1242 }
 0xcd7   :  { %4073 = vrsqrt.f32 %v1246_v44  ;;  %v1245_v46 = vmul.f32 0.015625, %v1243_v45  ;;  %v1430_v44 = vld [vmem:[#allocation7 + $0x78] sm:$0xff] }
 0xcd8   :  { %v3790_v45 = vpack.c.bf16 %v1430_v44, %v1429_v43 }
 0xcd9   :  { %v1247_v47 = vadd.f32 1e-12, %v1245_v46  ;;  %v1284_v46 = vld [vmem:[%s5008_s11] sm:$0x3] }
 0xcdb   :  { %4075 = vrsqrt.f32 %v1247_v47  ;;  %v1289_v47 = vrot.slane %v1284_v46, %v4502_v57 }
 0xce1   :  { %v4074_v48 = vpop.eup %4073 }
 0xce2   :  { %v1250_v10 = vmul.f32 %v4074_v48, %v1234_v19  ;;  %v1419_v19 = vld [vmem:[#allocation7 + $0x20] sm:$0xff]  ;;  %v1293_v48 = vrot.slane %v1284_v46, %v4508_v60 }
 0xce3   :  { %v3770_v18 = vpack.c.bf16 %v1420_v20, %v1419_v19 }
 0xce4   :  { %v1258_v52 = vmul.f32 %v3212_v49, %v1250_v10 }
 0xce5   :  { %v4076_v53 = vpop.eup %4075 }
 0xce6   :  { %v4703_v58 = vadd.f32 %v3213_v50, %v1258_v52  ;;  %v1251_v59 = vmul.f32 %v4076_v53, %v1235_v17  ;;  %v3768_v17 = vpack.c.bf16 %v1436_v15, %v1435_v13 }
 0xce8   :  { %3214 = vmatmul.mubr.msk.f32.vlgmr.msra.gmra.mrb[12].mxu0 %vm140_vm0, %v4703_v58  ;;  %v1259_v61 = vmul.f32 %v3212_v49, %v1251_v59  ;;  %3769 = vmatprep.subr.bf16.mxu1 %v3768_v17 }
 0xce9   :  { %1372 = vmatprep.mubr.f32.mxu0 %v4288_v33  ;;  %3771 = vmatpush3.bf16.msra.mxu1 %v3770_v18 }
 0xcea   :  { %v4708_v62 = vadd.f32 %v3213_v50, %v1259_v61  ;;  %3773 = vmatprep.subr.bf16.mxu1 %v3772_v51 }
 0xcec   :  { %3215 = vmatmul.mubr.msk.f32.gmra.mrb[14].mxu0 %vm140_vm0, %v4708_v62 }
 0xced   :  { %1675 = vmatprep.mubr.f32.mxu0 %v4288_v33  ;;  %3775 = vmatpush3.bf16.msra.mxu1 %v3774_v23 }
 0xcee   :  { %3777 = vmatprep.subr.bf16.mxu1 %v3776_v26 }
 0xcf1   :  { %3779 = vmatpush3.bf16.msra.mxu1 %v3778_v29 }
 0xcf2   :  { %3781 = vmatprep.subr.bf16.mxu1 %v3780_v34 }
 0xcf5   :  { %3783 = vmatpush3.bf16.msra.mxu1 %v3782_v37 }
 0xcf6   :  { %3785 = vmatprep.subr.bf16.mxu1 %v3784_v38  ;;  %v3216_v38 = vld [vmem:[%s5010_s13] ss:$0 sm:$0xff] }
 0xcf9   :  { %3787 = vmatpush3.bf16.msra.mxu1 %v3786_v1 }
 0xcfa   :  { %3789 = vmatprep.subr.bf16.mxu1 %v3788_v42 }
 0xcfd   :  { %3791 = vmatpush3.bf16.msra.mxu1 %v3790_v45 }
 0xdbb   :  { %v1368_v49 = vpop.f32.mrb[12].mxu0 }
 0xdbc   :  { %v1369_v10 = vadd.f32 %v1368_v49, %v1289_v47  ;;  %v1370_v50 = vpop.f32.mrb[13].mxu0 }
 0xdbd   :  { %v1371_v52 = vadd.f32 %v1370_v50, %v1293_v48 }
 0xdbe   :  { %v1379_v53 = vmul.f32 %v1369_v10, %v1369_v10 }
 0xdbf   :  { %v1380_v59 = vmul.f32 %v1371_v52, %v1371_v52  ;;  %v1374_v61 = vpop.f32.mrb[14].mxu0 }
 0xdc0   :  { %v1383_v63 = vmul.f32 %v1379_v53, %v1369_v10  ;;  %v1375_v56 = vadd.f32 %v1374_v61, %v1289_v47  ;;  %v1376_v0 = vpop.f32.mrb[15].mxu0 }
 0xdc1   :  { %v1384_v2 = vmul.f32 %v1380_v59, %v1371_v52  ;;  %v1377_v55 = vadd.f32 %v1376_v0, %v1293_v48  ;;  %v1579_v0 = vld [vmem:[#allocation2 + $0x98] sm:$0xff] }
 0xdc2   :  { %v1387_v3 = vmul.f32 0.044715, %v1383_v63  ;;  %v1381_v4 = vmul.f32 %v1375_v56, %v1375_v56 }
 0xdc3   :  { %v1388_v5 = vmul.f32 0.044715, %v1384_v2  ;;  %v1382_v6 = vmul.f32 %v1377_v55, %v1377_v55  ;;  %v1576_v2 = vld [vmem:[#allocation2 + $0x80] sm:$0xff] }
 0xdc4   :  { %v1391_v8 = vadd.f32 %v1387_v3, %v1369_v10  ;;  %v1385_v11 = vmul.f32 %v1381_v4, %v1375_v56  ;;  %v1581_v4 = vld [vmem:[#allocation2 + $0xa8] sm:$0xff] }
 0xdc5   :  { %v1392_v12 = vadd.f32 %v1388_v5, %v1371_v52  ;;  %v1386_v13 = vmul.f32 %v1382_v6, %v1377_v55  ;;  %v1583_v5 = vld [vmem:[#allocation2 + $0xb8] sm:$0xff] }
 0xdc6   :  { %v1395_v15 = vmul.f32 0.7978846, %v1391_v8  ;;  %v1389_v17 = vmul.f32 0.044715, %v1385_v11  ;;  %v3796_v6 = vpack.c.bf16 %v1583_v5, %v1581_v4  ;;  %v1580_v8 = vld [vmem:[#allocation2 + $0xa0] sm:$0xff]  ;;  %v1582_v11 = vld [vmem:[#allocation2 + $0xb0] sm:$0xff] }
 0xdc7   :  { %v1396_v19 = vmul.f32 0.7978846, %v1392_v12  ;;  %v1390_v20 = vmul.f32 0.044715, %v1386_v13  ;;  %v3798_v12 = vpack.c.bf16 %v1582_v11, %v1580_v8  ;;  %v1585_v13 = vld [vmem:[#allocation2 + $0xc8] sm:$0xff]  ;;  %v4780_v4 = vld [vmem:[%s5037_s26] sm:$0xff] }
 0xdc8   :  { %4077 = vtanh.f32 %v1395_v15  ;;  %v1393_v18 = vadd.f32 %v1389_v17, %v1375_v56  ;;  %v1587_v15 = vld [vmem:[#allocation2 + $0xd8] sm:$0xff] }
 0xdc9   :  { %v1394_v21 = vadd.f32 %v1390_v20, %v1377_v55  ;;  %4079 = vtanh.f32 %v1396_v19  ;;  %v3800_v17 = vpack.c.bf16 %v1587_v15, %v1585_v13  ;;  %v1584_v19 = vld [vmem:[#allocation2 + $0xc0] sm:$0xff]  ;;  %v1586_v20 = vld [vmem:[#allocation2 + $0xd0] sm:$0xff] }
 0xdca   :  { %v1397_v54 = vmul.f32 0.7978846, %v1393_v18  ;;  %v3802_v18 = vpack.c.bf16 %v1586_v20, %v1584_v19 }
 0xdcb   :  { %v1398_v51 = vmul.f32 0.7978846, %v1394_v21  ;;  %v1589_v21 = vld [vmem:[#allocation2 + $0xe8] sm:$0xff] }
 0xdcc   :  { %4081 = vtanh.f32 %v1397_v54  ;;  %v1591_v54 = vld [vmem:[#allocation2 + $0xf8] sm:$0xff] }
 0xdcd   :  { %4083 = vtanh.f32 %v1398_v51  ;;  %v3804_v51 = vpack.c.bf16 %v1591_v54, %v1589_v21 }
 0xdd2   :  { %v4078_v16 = vpop.eup %4077 }
 0xdd3   :  { %v4080_v22 = vpop.eup %4079  ;;  %v1403_v23 = vadd.f32 1.0, %v4078_v16  ;;  %v1588_v16 = vld [vmem:[#allocation2 + $0xe0] sm:$0xff] }
 0xdd4   :  { %v1404_v24 = vadd.f32 1.0, %v4080_v22  ;;  %v1590_v22 = vld [vmem:[#allocation2 + $0xf0] sm:$0xff] }
 0xdd5   :  { %v1407_v25 = vmul.f32 0.5, %v1403_v23  ;;  %v3806_v23 = vpack.c.bf16 %v1590_v22, %v1588_v16 }
 0xdd6   :  { %v4082_v26 = vpop.eup %4081  ;;  %v1408_v27 = vmul.f32 0.5, %v1404_v24 }
 0xdd7   :  { %v4084_v28 = vpop.eup %4083  ;;  %v1405_v29 = vadd.f32 1.0, %v4082_v26  ;;  %v1411_v32 = vmul.f32 %v1407_v25, %v1369_v10 }
 0xdd8   :  { %v1412_v30 = vmul.f32 %v1408_v27, %v1371_v52  ;;  %v1406_v31 = vadd.f32 1.0, %v4084_v28 }
 0xdd9   :  { %v1409_v34 = vmul.f32 0.5, %v1405_v29 }
 0xdda   :  { %1518 = vmatprep.mubr.f32.mxu1 %v1412_v30  ;;  %v1410_v35 = vmul.f32 0.5, %v1406_v31  ;;  %v3217_v31 = vld [vmem:[%s5011_s14] ss:$0 sm:$0xff] }
 0xddb   :  { %1519 = vmatmul.mubr.f32.vlgmr.msra.gmra.mrb[10].mxu1 %v1411_v32  ;;  %v1413_v36 = vmul.f32 %v1409_v34, %v1375_v56  ;;  %v1577_v56 = vld [vmem:[#allocation2 + $0x88] sm:$0xff]  ;;  %v3218_v34 = vld [vmem:[%s5012_s15] ss:$0 sm:$0xff] }
 0xddc   :  { %v1414_v9 = vmul.f32 %v1410_v35, %v1377_v55  ;;  %v1578_v55 = vld [vmem:[#allocation2 + $0x90] sm:$0xff] }
 0xddd   :  { %v3794_v3 = vpack.c.bf16 %v1578_v55, %v1576_v2 }
 0xdde   :  { %1523 = vmatprep.mubr.f32.mxu1 %v1414_v9 }
 0xddf   :  { %1524 = vmatmul.mubr.f32.gmra.mrb[12].mxu1 %v1413_v36 }
 0xeae   :  { %v3356_v37 = vpop.f32.mrb[10].mxu1 }
 0xeaf   :  { %v3357_v39 = vpop.f32.mrb[11].mxu1 }
 0xeb0   :  { %v3358_v7 = vadd.f32 %v3357_v39, %v3356_v37 }
 0xeb2   :  { %v1521_v40 = vadd.f32 %v3358_v7, %v3216_v38  ;;  %v3359_v41 = vpop.f32.mrb[12].mxu1  ;;  %v3219_v7 = vld [vmem:[%s5002_s5 + $0x2] sm:$0x3] }
 0xeb3   :  { %v3360_v1 = vpop.f32.mrb[13].mxu1 }
 0xeb4   :  { %v3361_v42 = vadd.f32 %v3360_v1, %v3359_v41  ;;  %v1529_v43 = vadd.f32 %v1521_v40, %v4703_v58  ;;  %v1598_v40 = vrot.slane %v3219_v7, %v4502_v57 }
 0xeb6   :  { %v1526_v44 = vadd.f32 %v3361_v42, %v3216_v38  ;;  %v1533_v45 = vsel %vm140_vm0, %v1529_v43, 0.0 }
 0xeb7   :  { %1534 = vadd.xlane.f32.xlu1 %v1533_v45 }
 0xeb8   :  { %v1530_v46 = vadd.f32 %v1526_v44, %v4708_v62  ;;  %v3792_v62 = vpack.c.bf16 %v1579_v0, %v1577_v56 }
 0xeba   :  { %v1536_v47 = vsel %vm140_vm0, %v1530_v46, 0.0  ;;  %3793 = vmatprep.subr.bf16.mxu0 %v3792_v62 }
 0xebb   :  { %1537 = vadd.xlane.f32.xlu0 %v1536_v47  ;;  %3795 = vmatpush1.bf16.msra.mxu0 %v3794_v3 }
 0xebc   :  { %3797 = vmatprep.subr.bf16.mxu0 %v3796_v6  ;;  %v4786_v6 = vld [vmem:[%s5037_s26 + $0x8] sm:$0xff] }
 0xebf   :  { %3799 = vmatpush1.bf16.msra.mxu0 %v3798_v12 }
 0xec0   :  { %3801 = vmatprep.subr.bf16.mxu0 %v3800_v17 }
 0xec3   :  { %3803 = vmatpush1.bf16.msra.mxu0 %v3802_v18 }
 0xec4   :  { %3805 = vmatprep.subr.bf16.mxu0 %v3804_v51 }
 0xec7   :  { %3807 = vmatpush1.bf16.msra.mxu0 %v3806_v23 }
 0xf44   :  { %v1535_v48 = vpop.xlane.xlu1 %1534 }
 0xf45   :  { %v1539_v49 = vmul.f32 0.015625, %v1535_v48 }
 0xf47   :  { %v1541_v10 = vsub.f32 %v1529_v43, %v1539_v49  ;;  %v1602_v43 = vrot.slane %v3219_v7, %v4508_v60 }
 0xf48   :  { %v1538_v50 = vpop.xlane.xlu0 %1537 }
 0xf49   :  { %v1540_v52 = vmul.f32 0.015625, %v1538_v50  ;;  %v1543_v53 = vmul.f32 %v1541_v10, %v1541_v10 }
 0xf4b   :  { %v1542_v59 = vsub.f32 %v1530_v46, %v1540_v52  ;;  %v1545_v61 = vsel %vm140_vm0, %v1543_v53, 0.0 }
 0xf4c   :  { %1546 = vadd.xlane.f32.xlu1 %v1545_v61 }
 0xf4d   :  { %v1544_v58 = vmul.f32 %v1542_v59, %v1542_v59 }
 0xf4f   :  { %v1548_v63 = vsel %vm140_vm0, %v1544_v58, 0.0 }
 0xf50   :  { %1549 = vadd.xlane.f32.xlu0 %v1548_v63 }
 0xfd9   :  { %v1547_v24 = vpop.xlane.xlu1 %1546 }
 0xfda   :  { %v1551_v25 = vmul.f32 0.015625, %v1547_v24 }
 0xfdc   :  { %v1553_v26 = vadd.f32 1e-12, %v1551_v25 }
 0xfdd   :  { %v1550_v27 = vpop.xlane.xlu0 %1549 }
 0xfde   :  { %4085 = vrsqrt.f32 %v1553_v26  ;;  %v1552_v28 = vmul.f32 0.015625, %v1550_v27 }
 0xfe0   :  { %v1554_v29 = vadd.f32 1e-12, %v1552_v28 }
 0xfe2   :  { %4087 = vrsqrt.f32 %v1554_v29 }
 0xfe8   :  { %v4086_v30 = vpop.eup %4085 }
 0xfe9   :  { %v1557_v32 = vmul.f32 %v4086_v30, %v1541_v10 }
 0xfeb   :  { %v1565_v35 = vmul.f32 %v3217_v31, %v1557_v32 }
 0xfec   :  { %v4088_v9 = vpop.eup %4087 }
 0xfed   :  { %v4733_v36 = vadd.f32 %v3218_v34, %v1565_v35  ;;  %v1558_v37 = vmul.f32 %v4088_v9, %v1542_v59 }
 0xfef   :  { %3220 = vmatmul.mubr.msk.f32.vlgmr.msra.gmra.mrb[16].mxu0 %vm140_vm0, %v4733_v36  ;;  %v1566_v38 = vmul.f32 %v3217_v31, %v1558_v37 }
 0xff0   :  { %1681 = vmatprep.mubr.f32.mxu0 %v4288_v33 }
 0xff1   :  { %v4738_v39 = vadd.f32 %v3218_v34, %v1566_v38 }
 0xff3   :  { %3221 = vmatmul.mubr.msk.f32.gmra.mrb[18].mxu0 %vm140_vm0, %v4738_v39 }
0x10c2   :  { %v1677_v41 = vpop.f32.mrb[16].mxu0 }
0x10c3   :  { %v1678_v1 = vadd.f32 %v1677_v41, %v1598_v40  ;;  %v1679_v42 = vpop.f32.mrb[17].mxu0 }
0x10c4   :  { %v1680_v48 = vadd.f32 %v1679_v42, %v1602_v43 }
0x10c5   :  { %v4747_v44 = vmul.f32 0.25, %v1678_v1 }
0x10c6   :  { %v1683_v45 = vpop.f32.mrb[18].mxu0 }
0x10c7   :  { %v1684_v46 = vadd.f32 %v1683_v45, %v1598_v40  ;;  %v1685_v47 = vpop.f32.mrb[19].mxu0  ;;  %3547 = vmatprep.mubr.msk.f32.mxu0 %vm303_vm1, %v4747_v44 }
0x10c8   :  { %v1686_v49 = vadd.f32 %v1685_v47, %v1602_v43 }
0x10c9   :  { %v4751_v10 = vpack.i.bf16 %v1684_v46, %v1678_v1  ;;  %v4761_v53 = vmul.f32 0.25, %v1684_v46 }
0x10ca   :  { %v3814_v50 = vpack.c.bf16 %v1686_v49, %v1680_v48  ;;  %v4753_v52 = vpack.i.bf16 %v1686_v49, %v1680_v48 }
0x10cb   :  { %4003 = vrot.lane.b32.xlu1 %v4751_v10, %s4289_s23 }
0x10cf   :  { %4008 = vrot.lane.b32.xlu1 %v4751_v10, %s4293_s16 }
0x10d3   :  { %4013 = vrot.lane.b32.xlu1 %v4751_v10, %s4291_s25 }
0x10d7   :  { %1886 = vrot.lane.b32.xlu1 %v4761_v53, %s4290_s2 }
0x10db   :  { %2086 = vrot.lane.b32.xlu1 %v4747_v44, %s4292_s3 }
0x10df   :  { %2088 = vrot.lane.b32.xlu1 %v4761_v53, %s4292_s3 }
0x113d   :  { %v4004_v59 = vpop.permute.xlu1 %4003 }
0x113e   :  { %v4006_v61 = vunpack.i.h.bf16 %v4004_v59  ;;  %v4005_v58 = vunpack.i.l.bf16 %v4004_v59 }
0x1140   :  { %v3808_v63 = vpack.c.bf16 %v4006_v61, %v4005_v58 }
0x1141   :  { %v4009_v56 = vpop.permute.xlu1 %4008 }
0x1142   :  { %3810 = vmatprep.subr.msk.bf16.mxu0 %vm4533_vm2, %v3808_v63  ;;  %v4011_v0 = vunpack.i.h.bf16 %v4009_v56  ;;  %v4010_v62 = vunpack.i.l.bf16 %v4009_v56 }
0x1143   :  { %3813 = vmatpush3.bf16.xpose.msk.msra.mxu0 %vm4533_vm2, %v3808_v63 }
0x1144   :  { %3815 = vmatprep.subr.bf16.mxu0 %v3814_v50  ;;  %v3818_v2 = vpack.c.bf16 %v4011_v0, %v4010_v62 }
0x1145   :  { %v4014_v25 = vpop.permute.xlu1 %4013 }
0x1146   :  { %v4016_v27 = vunpack.i.h.bf16 %v4014_v25  ;;  %v4015_v28 = vunpack.i.l.bf16 %v4014_v25 }
0x1148   :  { %v3828_v31 = vpack.c.bf16 %v4016_v27, %v4015_v28 }
0x1149   :  { %v1887_v34 = vpop.permute.xlu1 %1886 }
0x114a   :  { %3548 = vmatmul.mubr.msk.f32.vlgmr.msra.gmra.mrb[20].mxu0 %vm303_vm1, %v4761_v53 }
0x114b   :  { %3817 = vmatpush3.bf16.msra.mxu0 %v3814_v50 }
0x114c   :  { %3820 = vmatprep.subr.msk.bf16.mxu0 %vm4533_vm2, %v3818_v2 }
0x114d   :  { %v2087_v35 = vpop.permute.xlu1 %2086 }
0x1151   :  { %v2089_v9 = vpop.permute.xlu1 %2088 }
0x121d   :  { %v3549_v55 = vpop.f32.mrb[20].mxu0 }
0x121e   :  { %v1772_v3 = vpop.f32.mrb[21].mxu0  ;;  %v1778_v8 = vadd.f32 %v4786_v6, %v3549_v55 }
0x121f   :  { %v1773_v5 = vadd.f32 %v4780_v4, %v1772_v3 }
0x1220   :  { %v1784_v12 = vsel %vm303_vm1, %v1778_v8, -inf }
0x1221   :  { %v1781_v11 = vsel %vm303_vm1, %v1773_v5, -inf }
0x1222   :  { %1782 = vmax.xlane.f32.xlu0 %v1781_v11 }
0x1226   :  { %1785 = vmax.xlane.f32.xlu0 %v1784_v12 }
0x12af   :  { %v1783_v13 = vpop.xlane.xlu0 %1782 }
0x12b0   :  { %v1787_v15 = vsub.f32 %v1773_v5, %v1783_v13 }
0x12b2   :  { %v1789_v17 = vmul.f32 1.442695, %v1787_v15 }
0x12b3   :  { %v1786_v19 = vpop.xlane.xlu0 %1785 }
0x12b4   :  { %4089 = vpow2.f32 %v1789_v17  ;;  %v1788_v20 = vsub.f32 %v1778_v8, %v1786_v19 }
0x12b6   :  { %v1791_v18 = vmul.f32 1.442695, %v1788_v20 }
0x12b8   :  { %4091 = vpow2.f32 %v1791_v18 }
0x12be   :  { %v4090_v21 = vpop.eup %4089 }
0x12bf   :  { %v1793_v54 = vsel %vm303_vm1, %v4090_v21, 0.0 }
0x12c0   :  { %1794 = vadd.xlane.f32.xlu0 %v1793_v54 }
0x12c2   :  { %v4092_v51 = vpop.eup %4091 }
0x12c3   :  { %v1796_v16 = vsel %vm303_vm1, %v4092_v51, 0.0 }
0x12c4   :  { %1797 = vadd.xlane.f32.xlu0 %v1796_v16 }
0x12da   :  { %1884 = vrot.lane.b32.xlu0 %v4747_v44, %s4290_s2 }
0x134d   :  { %v1795_v22 = vpop.xlane.xlu0 %1794 }
0x134e   :  { %4093 = vrcp.f32 %v1795_v22 }
0x1351   :  { %v1798_v23 = vpop.xlane.xlu0 %1797 }
0x1352   :  { %4095 = vrcp.f32 %v1798_v23 }
0x1355   :  { %v1885_v32 = vpop.permute.xlu0 %1884 }
0x1358   :  { %v4094_v24 = vpop.eup %4093 }
0x1359   :  { %v1801_v26 = vmul.f32 %v4094_v24, %v4090_v21 }
0x135b   :  { %3554 = vmatprep.mubr.msk.f32.mxu0 %vm303_vm1, %v1801_v26 }
0x135c   :  { %v4096_v29 = vpop.eup %4095 }
0x135d   :  { %v1802_v30 = vmul.f32 %v4096_v29, %v4092_v51 }
0x135f   :  { %3555 = vmatmul.mubr.msk.f32.vlgmr.msra.gmra.mrb[22].mxu0 %vm303_vm1, %v1802_v30 }
0x1360   :  { %3823 = vmatpush3.bf16.xpose.msk.msra.mxu0 %vm4533_vm2, %v3818_v2  ;;  %3561 = vmatprep.mubr.msk.f32.mxu0 %vm303_vm1, %v1885_v32 }
0x1361   :  { %3830 = vmatprep.subr.msk.bf16.mxu0 %vm4533_vm2, %v3828_v31 }
0x1367   :  { %3562 = vmatmul.mubr.msk.f32.vlgmr.msra.gmra.mrb[24].mxu0 %vm303_vm1, %v1887_v34 }
0x1368   :  { %3833 = vmatpush3.bf16.xpose.msk.msra.mxu0 %vm4533_vm2, %v3828_v31  ;;  %3575 = vmatprep.mubr.msk.f32.mxu0 %vm303_vm1, %v2087_v35 }
0x136f   :  { %3576 = vmatmul.mubr.msk.f32.vlgmr.msra.gmra.mrb[26].mxu0 %vm303_vm1, %v2089_v9 }
0x1432   :  { %v4807_v37 = vpop.f32.mrb[22].mxu0 }
0x1433   :  { %v4809_v38 = vpop.f32.mrb[23].mxu0 }
0x143a   :  { %v3563_v7 = vpop.f32.mrb[24].mxu0 }
0x143b   :  { %v1972_v40 = vadd.f32 %v4786_v6, %v3563_v7  ;;  %v1966_v41 = vpop.f32.mrb[25].mxu0 }
0x143c   :  { %v1967_v1 = vadd.f32 %v4780_v4, %v1966_v41 }
0x143d   :  { %v1978_v42 = vsel %vm303_vm1, %v1972_v40, -inf }
0x143e   :  { %1979 = vmax.xlane.f32.xlu0 %v1978_v42  ;;  %v1975_v43 = vsel %vm303_vm1, %v1967_v1, -inf }
0x143f   :  { %1976 = vmax.xlane.f32.xlu1 %v1975_v43 }
0x1442   :  { %v3577_v45 = vpop.f32.mrb[26].mxu0 }
0x1443   :  { %v2174_v46 = vadd.f32 %v4786_v6, %v3577_v45  ;;  %v2168_v47 = vpop.f32.mrb[27].mxu0 }
0x1444   :  { %v2169_v48 = vadd.f32 %v4780_v4, %v2168_v47 }
0x1445   :  { %v2180_v49 = vsel %vm303_vm1, %v2174_v46, -inf }
0x1446   :  { %2181 = vmax.xlane.f32.xlu1 %v2180_v49  ;;  %v2177_v50 = vsel %vm303_vm1, %v2169_v48, -inf }
0x1447   :  { %2178 = vmax.xlane.f32.xlu0 %v2177_v50 }
0x14cb   :  { %v1980_v59 = vpop.xlane.xlu0 %1979 }
0x14cc   :  { %v1982_v61 = vsub.f32 %v1972_v40, %v1980_v59  ;;  %v1977_v58 = vpop.xlane.xlu1 %1976 }
0x14cd   :  { %v1981_v63 = vsub.f32 %v1967_v1, %v1977_v58 }
0x14ce   :  { %v1985_v56 = vmul.f32 1.442695, %v1982_v61 }
0x14cf   :  { %v1983_v0 = vmul.f32 1.442695, %v1981_v63 }
0x14d0   :  { %4097 = vpow2.f32 %v1985_v56 }
0x14d1   :  { %4099 = vpow2.f32 %v1983_v0 }
0x14d3   :  { %v2182_v62 = vpop.xlane.xlu1 %2181 }
0x14d4   :  { %v2184_v2 = vsub.f32 %v2174_v46, %v2182_v62  ;;  %v2179_v55 = vpop.xlane.xlu0 %2178 }
0x14d5   :  { %v2183_v3 = vsub.f32 %v2169_v48, %v2179_v55 }
0x14d6   :  { %v2187_v5 = vmul.f32 1.442695, %v2184_v2 }
0x14d7   :  { %v2185_v8 = vmul.f32 1.442695, %v2183_v3 }
0x14d8   :  { %4101 = vpow2.f32 %v2187_v5 }
0x14d9   :  { %4103 = vpow2.f32 %v2185_v8 }
0x14da   :  { %v4098_v11 = vpop.eup %4097 }
0x14db   :  { %v4100_v12 = vpop.eup %4099  ;;  %v1990_v13 = vsel %vm303_vm1, %v4098_v11, 0.0 }
0x14dc   :  { %1991 = vadd.xlane.f32.xlu1 %v1990_v13  ;;  %v1987_v15 = vsel %vm303_vm1, %v4100_v12, 0.0 }
0x14dd   :  { %1988 = vadd.xlane.f32.xlu0 %v1987_v15 }
0x14e2   :  { %v4102_v17 = vpop.eup %4101 }
0x14e3   :  { %v4104_v19 = vpop.eup %4103  ;;  %v2192_v20 = vsel %vm303_vm1, %v4102_v17, 0.0 }
0x14e4   :  { %2193 = vadd.xlane.f32.xlu1 %v2192_v20  ;;  %v2189_v18 = vsel %vm303_vm1, %v4104_v19, 0.0 }
0x14e5   :  { %2190 = vadd.xlane.f32.xlu0 %v2189_v18  ;;  %v2517_v18 = vld [vmem:[#allocation5 + $0x40] sm:$0xff] }
0x14f5   :  { %4023 = vrot.lane.b32.xlu1 %v4753_v52, %s4292_s3 }
0x14f9   :  { %4028 = vrot.lane.b32.xlu1 %v4751_v10, %s4285_s1 }
0x14fb   :  { %4018 = vrot.lane.b32.xlu0 %v4753_v52, %s4290_s2 }
0x14fd   :  { %2286 = vrot.lane.b32.xlu1 %v4747_v44, %s4294_s28 }
0x14ff   :  { %2288 = vrot.lane.b32.xlu0 %v4761_v53, %s4294_s28 }
0x1569   :  { %v1992_v54 = vpop.xlane.xlu1 %1991 }
0x156a   :  { %v1989_v21 = vpop.xlane.xlu0 %1988 }
0x156b   :  { %4105 = vrcp.f32 %v1989_v21  ;;  %v2518_v21 = vld [vmem:[#allocation5 + $0x48] sm:$0xff] }
0x156c   :  { %4107 = vrcp.f32 %v1992_v54  ;;  %v2519_v54 = vld [vmem:[#allocation5 + $0x50] sm:$0xff] }
0x1571   :  { %v2194_v51 = vpop.xlane.xlu1 %2193 }
0x1572   :  { %v2191_v16 = vpop.xlane.xlu0 %2190 }
0x1573   :  { %4109 = vrcp.f32 %v2191_v16  ;;  %v2520_v16 = vld [vmem:[#allocation5 + $0x58] sm:$0xff] }
0x1574   :  { %4111 = vrcp.f32 %v2194_v51  ;;  %v3848_v51 = vpack.c.bf16 %v2518_v21, %v2517_v18  ;;  %v3264_v18 = vld [vmem:[%s5007_s10 + $0xd0] sm:$0xff] }
0x1575   :  { %v4106_v22 = vpop.eup %4105  ;;  %v4024_v23 = vpop.permute.xlu1 %4023 }
0x1576   :  { %v4019_v10 = vpop.permute.xlu0 %4018  ;;  %v1995_v24 = vmul.f32 %v4106_v22, %v4100_v12  ;;  %v4026_v25 = vunpack.i.h.bf16 %v4024_v23  ;;  %v4025_v26 = vunpack.i.l.bf16 %v4024_v23  ;;  %v4108_v29 = vpop.eup %4107  ;;  %v3852_v22 = vpack.c.bf16 %v2520_v16, %v2519_v54  ;;  %v2521_v23 = vld [vmem:[#allocation5 + $0x60] sm:$0xff]  ;;  %v3267_v54 = vld [vmem:[%s5007_s10 + $0xe8] sm:$0xff] }
0x1577   :  { %v4021_v27 = vunpack.i.h.bf16 %v4019_v10  ;;  %v4020_v28 = vunpack.i.l.bf16 %v4019_v10  ;;  %v1996_v35 = vmul.f32 %v4108_v29, %v4098_v11  ;;  %v2522_v10 = vld [vmem:[#allocation5 + $0x68] sm:$0xff] }
0x1578   :  { %3568 = vmatprep.mubr.msk.f32.mxu1 %vm303_vm1, %v1995_v24  ;;  %v3834_v30 = vpack.c.bf16 %v4026_v25, %v4025_v26  ;;  %v3856_v24 = vpack.c.bf16 %v2522_v10, %v2521_v23  ;;  %v2523_v25 = vld [vmem:[#allocation5 + $0x70] sm:$0xff]  ;;  %v2524_v26 = vld [vmem:[#allocation5 + $0x78] sm:$0xff] }
0x1579   :  { %v3824_v44 = vpack.c.bf16 %v4021_v27, %v4020_v28  ;;  %v4029_v53 = vpop.permute.xlu1 %4028  ;;  %v3860_v27 = vpack.c.bf16 %v2524_v26, %v2523_v25  ;;  %v3268_v23 = vld [vmem:[%s5007_s10 + $0xf0] sm:$0xff] }
0x157a   :  { %v4031_v31 = vunpack.i.h.bf16 %v4029_v53  ;;  %v4030_v32 = vunpack.i.l.bf16 %v4029_v53  ;;  %v2289_v42 = vpop.permute.xlu0 %2288 }
0x157b   :  { %3825 = vmatprep.subr.bf16.mxu1 %v3824_v44 }
0x157c   :  { %3827 = vmatpush3.bf16.msra.mxu1 %v3824_v44  ;;  %v3838_v40 = vpack.c.bf16 %v4031_v31, %v4030_v32 }
0x157d   :  { %v4110_v34 = vpop.eup %4109  ;;  %3835 = vmatprep.subr.bf16.mxu1 %v3834_v30  ;;  %v2287_v1 = vpop.permute.xlu1 %2286 }
0x157e   :  { %v4112_v9 = vpop.eup %4111  ;;  %v2197_v7 = vmul.f32 %v4110_v34, %v4104_v19 }
0x157f   :  { %3569 = vmatmul.mubr.msk.f32.vlgmr.msra.gmra.mrb[14].mxu1 %vm303_vm1, %v1996_v35  ;;  %v2198_v41 = vmul.f32 %v4112_v9, %v4102_v17 }
0x1580   :  { %3837 = vmatpush3.bf16.msra.mxu1 %v3834_v30  ;;  %3582 = vmatprep.mubr.msk.f32.mxu1 %vm303_vm1, %v2197_v7 }
0x1581   :  { %3840 = vmatprep.subr.msk.bf16.mxu1 %vm4533_vm2, %v3838_v40 }
0x1583   :  { %3583 = vmatmul.mubr.msk.f32.vlgmr.msra.gmra.mrb[16].mxu1 %vm303_vm1, %v2198_v41 }
0x1584   :  { %3589 = vmatprep.mubr.msk.f32.mxu1 %vm303_vm1, %v2287_v1 }
0x1589   :  { %3843 = vmatpush3.bf16.xpose.msk.msra.mxu1 %vm4533_vm2, %v3838_v40 }
0x1590   :  { %3590 = vmatmul.mubr.msk.f32.vlgmr.msra.gmra.mrb[18].mxu1 %vm303_vm1, %v2289_v42 }
0x1591   :  { %2762 = vmatprep.mubr.f32.mxu1 %v4288_v33 }
0x1652   :  { %v3570_v43 = vpop.f32.mrb[14].mxu1 }
0x1653   :  { %v2077_v45 = vpop.f32.mrb[15].mxu1 }
0x1656   :  { %v3584_v46 = vpop.f32.mrb[16].mxu1 }
0x1657   :  { %v2277_v47 = vpop.f32.mrb[17].mxu1 }
0x1663   :  { %v3591_v48 = vpop.f32.mrb[18].mxu1 }
0x1664   :  { %v2374_v49 = vadd.f32 %v4786_v6, %v3591_v48  ;;  %v2368_v50 = vpop.f32.mrb[19].mxu1 }
0x1665   :  { %v2369_v59 = vadd.f32 %v4780_v4, %v2368_v50 }
0x1666   :  { %v2380_v61 = vsel %vm303_vm1, %v2374_v49, -inf }
0x1667   :  { %2381 = vmax.xlane.f32.xlu0 %v2380_v61  ;;  %v2377_v14 = vsel %vm303_vm1, %v2369_v59, -inf }
0x1668   :  { %2378 = vmax.xlane.f32.xlu1 %v2377_v14 }
0x1679   :  { %4033 = vrot.lane.b32.xlu1 %v4753_v52, %s4294_s28 }
0x167d   :  { %2490 = vrot.lane.b32.xlu1 %v3570_v43, %s4285_s1 }
0x1681   :  { %2496 = vrot.lane.b32.xlu1 %v2277_v47, %s4291_s25 }
0x1685   :  { %2498 = vrot.lane.b32.xlu1 %v3584_v46, %s4291_s25 }
0x16f4   :  { %v2382_v58 = vpop.xlane.xlu0 %2381 }
0x16f5   :  { %v2384_v6 = vsub.f32 %v2374_v49, %v2382_v58  ;;  %v2379_v63 = vpop.xlane.xlu1 %2378 }
0x16f6   :  { %v2383_v56 = vsub.f32 %v2369_v59, %v2379_v63 }
0x16f7   :  { %v2387_v4 = vmul.f32 1.442695, %v2384_v6 }
0x16f8   :  { %v2385_v0 = vmul.f32 1.442695, %v2383_v56 }
0x16f9   :  { %v4034_v62 = vpop.permute.xlu1 %4033 }
0x16fa   :  { %4113 = vpow2.f32 %v2385_v0  ;;  %v4036_v2 = vunpack.i.h.bf16 %v4034_v62  ;;  %v4035_v55 = vunpack.i.l.bf16 %v4034_v62  ;;  %v3257_v0 = vld [vmem:[%s5007_s10 + $0x98] sm:$0xff] }
0x16fb   :  { %4115 = vpow2.f32 %v2387_v4 }
0x16fc   :  { %v3844_v3 = vpack.c.bf16 %v4036_v2, %v4035_v55  ;;  %v3254_v2 = vld [vmem:[%s5007_s10 + $0x80] sm:$0xff]  ;;  %v3256_v55 = vld [vmem:[%s5007_s10 + $0x90] sm:$0xff] }
0x16fd   :  { %v2491_v53 = vpop.permute.xlu1 %2490 }
0x16fe   :  { %3845 = vmatprep.subr.bf16.mxu0 %v3844_v3  ;;  %v2511_v35 = vsel %vm303_vm1, %v4807_v37, %v2491_v53 }
0x16ff   :  { %3847 = vmatpush3.bf16.msra.mxu0 %v3844_v3  ;;  %v3866_v3 = vpack.c.bf16 %v3256_v55, %v3254_v2  ;;  %v2836_v2 = vld [vmem:[#allocation7 + $0x1c0] sm:$0xff]  ;;  %v2837_v55 = vld [vmem:[#allocation7 + $0x1c8] sm:$0xff] }
0x1700   :  { %3849 = vmatprep.subr.bf16.mxu0 %v3848_v51 }
0x1701   :  { %v2497_v29 = vpop.permute.xlu1 %2496 }
0x1704   :  { %v4114_v52 = vpop.eup %4113 }
0x1705   :  { %v2389_v5 = vsel %vm303_vm1, %v4114_v52, 0.0  ;;  %v4116_v8 = vpop.eup %4115  ;;  %v2499_v31 = vpop.permute.xlu1 %2498 }
0x1706   :  { %2390 = vadd.xlane.f32.xlu0 %v2389_v5  ;;  %v2392_v11 = vsel %vm303_vm1, %v4116_v8, 0.0  ;;  %v2513_v40 = vsel %vm1120_vm3, %v2511_v35, %v2499_v31  ;;  %v3261_v5 = vld [vmem:[%s5007_s10 + $0xb8] sm:$0xff]  ;;  %v3253_v31 = vld [vmem:[%s5006_s9 + $0x1] ss:$0 sm:$0xff] }
0x170a   :  { %2393 = vadd.xlane.f32.xlu0 %v2392_v11  ;;  %v3258_v11 = vld [vmem:[%s5007_s10 + $0xa0] sm:$0xff] }
0x1720   :  { %2488 = vrot.lane.b32.xlu0 %v2077_v45, %s4285_s1  ;;  %s3170_s1 = sshll.u32 %s4297_s29, 4  ;;  %s3171_s1 = int_to_ptr.vmem [resolvable:$true] %s3170_s1 }
0x1721   :  { %s4249_s2 = scalar_lea.vmem %s3171_s1, 32  ;;  %p4254_p13 = scmp.lt.s32.totalorder %s3171_s1, %s3171_s1 }
0x1722   :  { %p4250_p12 = scmp.ne.s32.totalorder %s3171_s1, %s4249_s2  ;;  %p4255_p0 = scmp.lt.s32.totalorder %s4249_s2, %s4249_s2 }
0x1724   :  { %p4256_p1 = por %p4255_p0, %p4254_p13 }
0x1726   :  { %p4257_p2 = pnand %p4256_p1, %p4250_p12 }
0x1793   :  { %v2391_v12 = vpop.xlane.xlu0 %2390 }
0x1794   :  { %4117 = vrcp.f32 %v2391_v12  ;;  %v3260_v12 = vld [vmem:[%s5007_s10 + $0xb0] sm:$0xff] }
0x1797   :  { %v2394_v13 = vpop.xlane.xlu0 %2393 }
0x1798   :  { %4119 = vrcp.f32 %v2394_v13  ;;  %v3870_v13 = vpack.c.bf16 %v3260_v12, %v3258_v11  ;;  %v2838_v11 = vld [vmem:[#allocation7 + $0x1d0] sm:$0xff]  ;;  %v2839_v12 = vld [vmem:[#allocation7 + $0x1d8] sm:$0xff] }
0x179b   :  { %v2489_v30 = vpop.permute.xlu0 %2488 }
0x179c   :  { %v2510_v32 = vsel %vm303_vm1, %v4809_v38, %v2489_v30  ;;  %v3247_v38 = vld [vmem:[%s5004_s7 + $0x1] ss:$0 sm:$0xff] }
0x179d   :  { %v2512_v9 = vsel %vm1120_vm3, %v2510_v32, %v2497_v29  ;;  %v3252_v29 = vld [vmem:[%s5005_s8 + $0x1] ss:$0 sm:$0xff] }
0x179e   :  { %v4118_v15 = vpop.eup %4117 }
0x179f   :  { %v2397_v17 = vmul.f32 %v4118_v15, %v4114_v52  ;;  %v3259_v52 = vld [vmem:[%s5007_s10 + $0xa8] sm:$0xff] }
0x17a0   :  { %v3263_v15 = vld [vmem:[%s5007_s10 + $0xc8] sm:$0xff] }
0x17a1   :  { %3596 = vmatprep.mubr.msk.f32.mxu0 %vm303_vm1, %v2397_v17  ;;  %v3265_v17 = vld [vmem:[%s5007_s10 + $0xd8] sm:$0xff] }
0x17a2   :  { %v4120_v19 = vpop.eup %4119 }
0x17a3   :  { %v2398_v20 = vmul.f32 %v4120_v19, %v4116_v8  ;;  %v3868_v8 = vpack.c.bf16 %v3261_v5, %v3259_v52  ;;  %v3872_v19 = vpack.c.bf16 %v3265_v17, %v3263_v15  ;;  %v2820_v52 = vld [vmem:[#allocation7 + $0x140] sm:$0xff]  ;;  %v2821_v5 = vld [vmem:[#allocation7 + $0x148] sm:$0xff]  ;;  %v3900_v15 = vpack.c.bf16 %v2839_v12, %v2838_v11  ;;  %v2823_v17 = vld [vmem:[#allocation7 + $0x158] sm:$0xff] }
0x17a5   :  { %3597 = vmatmul.mubr.msk.f32.vlgmr.msra.gmra.mrb[28].mxu0 %vm303_vm1, %v2398_v20  ;;  %v3262_v20 = vld [vmem:[%s5007_s10 + $0xc0] sm:$0xff] }
0x17a6   :  { %3851 = vmatpush3.bf16.msra.mxu0 %v3848_v51  ;;  %v3874_v21 = vpack.c.bf16 %v3264_v18, %v3262_v20  ;;  %v3269_v51 = vld [vmem:[%s5007_s10 + $0xf8] sm:$0xff]  ;;  %v2841_v20 = vld [vmem:[#allocation7 + $0x1e8] sm:$0xff] }
0x17a7   :  { %3853 = vmatprep.subr.bf16.mxu0 %v3852_v22  ;;  %v3876_v16 = vpack.c.bf16 %v3269_v51, %v3267_v54  ;;  %v2824_v54 = vld [vmem:[#allocation7 + $0x160] sm:$0xff]  ;;  %v2825_v51 = vld [vmem:[#allocation7 + $0x168] sm:$0xff] }
0x17aa   :  { %3855 = vmatpush3.bf16.msra.mxu0 %v3852_v22  ;;  %v3266_v22 = vld [vmem:[%s5007_s10 + $0xe0] sm:$0xff] }
0x17ab   :  { %3857 = vmatprep.subr.bf16.mxu0 %v3856_v24  ;;  %v3878_v10 = vpack.c.bf16 %v3268_v23, %v3266_v22  ;;  %v2843_v22 = vld [vmem:[#allocation7 + $0x1f8] sm:$0xff]  ;;  %v3906_v23 = vpack.c.bf16 %v2825_v51, %v2824_v54 }
0x17ae   :  { %3859 = vmatpush3.bf16.msra.mxu0 %v3856_v24 }
0x17af   :  { %3861 = vmatprep.subr.bf16.mxu0 %v3860_v27 }
0x17b2   :  { %3863 = vmatpush3.bf16.msra.mxu0 %v3860_v27 }
0x1878   :  { %v3598_v28 = vpop.f32.mrb[28].mxu0 }
0x1879   :  { %2506 = vrot.lane.b32.xlu1 %v3598_v28, %s4293_s16  ;;  %v2477_v44 = vpop.f32.mrb[29].mxu0 }
0x187a   :  { %2504 = vrot.lane.b32.xlu0 %v2477_v44, %s4293_s16 }
0x18eb   :  { %v2507_v34 = vpop.permute.xlu1 %2506 }
0x18ec   :  { %v2505_v7 = vpop.permute.xlu0 %2504  ;;  %v2515_v1 = vsel %vm1123_vm4, %v2513_v40, %v2507_v34 }
0x18ed   :  { %v2514_v41 = vsel %vm1123_vm4, %v2512_v9, %v2505_v7 }
0x18ee   :  { %3615 = vmatprep.mubr.msk.f32.mxu0 %vm140_vm0, %v2514_v41  ;;  %v2828_v41 = vld [vmem:[#allocation7 + $0x180] sm:$0xff] }
0x18ef   :  { %3616 = vmatmul.mubr.msk.f32.vlgmr.msra.gmra.mrb[30].mxu0 %vm140_vm0, %v2515_v1  ;;  %v2829_v1 = vld [vmem:[#allocation7 + $0x188] sm:$0xff] }
0x19c2   :  { %v3617_v42 = vpop.f32.mrb[30].mxu0 }
0x19c3   :  { %v2611_v43 = vadd.f32 %v3617_v42, %v3247_v38  ;;  %v2605_v37 = vpop.f32.mrb[31].mxu0  ;;  %v2812_v42 = vld [vmem:[#allocation7 + $0x100] sm:$0xff] }
0x19c4   :  { %v2606_v45 = vadd.f32 %v3247_v38, %v2605_v37  ;;  %v3880_v38 = vpack.c.bf16 %v2829_v1, %v2828_v41 }
0x19c5   :  { %v2615_v46 = vadd.f32 %v2611_v43, %v4738_v39  ;;  %v2813_v43 = vld [vmem:[#allocation7 + $0x108] sm:$0xff] }
0x19c6   :  { %v2614_v47 = vadd.f32 %v2606_v45, %v4733_v36  ;;  %v3255_v36 = vld [vmem:[%s5007_s10 + $0x88] sm:$0xff]  ;;  %v3882_v37 = vpack.c.bf16 %v2813_v43, %v2812_v42  ;;  %3881 = vmatprep.subr.bf16.mxu0 %v3880_v38  ;;  %v2830_v45 = vld [vmem:[#allocation7 + $0x190] sm:$0xff] }
0x19c7   :  { %v2623_v48 = vsel %vm140_vm0, %v2615_v46, 0.0  ;;  %v3864_v62 = vpack.c.bf16 %v3257_v0, %v3255_v36  ;;  %v2818_v36 = vld [vmem:[#allocation7 + $0x130] sm:$0xff]  ;;  %v2819_v0 = vld [vmem:[#allocation7 + $0x138] sm:$0xff] }
0x19c8   :  { %2624 = vadd.xlane.f32.xlu1 %v2623_v48  ;;  %v2620_v49 = vsel %vm140_vm0, %v2614_v47, 0.0  ;;  %3883 = vmatpush3.bf16.msra.mxu0 %v3882_v37  ;;  %v2814_v48 = vld [vmem:[#allocation7 + $0x110] sm:$0xff] }
0x19c9   :  { %2621 = vadd.xlane.f32.xlu0 %v2620_v49  ;;  %3865 = vmatprep.subr.bf16.mxu1 %v3864_v62  ;;  %v2815_v49 = vld [vmem:[#allocation7 + $0x118] sm:$0xff]  ;;  %v3894_v62 = vpack.c.bf16 %v2819_v0, %v2818_v36 }
0x19ca   :  { %3867 = vmatpush1.bf16.msra.mxu1 %v3866_v3  ;;  %v3896_v3 = vpack.c.bf16 %v2837_v55, %v2836_v2 }
0x19cb   :  { %3869 = vmatprep.subr.bf16.mxu1 %v3868_v8  ;;  %v3898_v8 = vpack.c.bf16 %v2821_v5, %v2820_v52 }
0x19ce   :  { %3871 = vmatpush1.bf16.msra.mxu1 %v3870_v13  ;;  %v2822_v13 = vld [vmem:[#allocation7 + $0x150] sm:$0xff] }
0x19cf   :  { %3873 = vmatprep.subr.bf16.mxu1 %v3872_v19  ;;  %v2840_v19 = vld [vmem:[#allocation7 + $0x1e0] sm:$0xff]  ;;  %v3902_v18 = vpack.c.bf16 %v2823_v17, %v2822_v13 }
0x19d2   :  { %3875 = vmatpush1.bf16.msra.mxu1 %v3874_v21  ;;  %v3904_v21 = vpack.c.bf16 %v2841_v20, %v2840_v19  ;;  %v3274_v19 = vld [vmem:[%s5010_s13 + $0x1] ss:$0 sm:$0xff] }
0x19d3   :  { %3877 = vmatprep.subr.bf16.mxu1 %v3876_v16  ;;  %v2842_v16 = vld [vmem:[#allocation7 + $0x1f0] sm:$0xff] }
0x19d6   :  { %3879 = vmatpush1.bf16.msra.mxu1 %v3878_v10  ;;  %v3908_v10 = vpack.c.bf16 %v2843_v22, %v2842_v16 }
0x1a55   :  { %v2625_v50 = vpop.xlane.xlu1 %2624 }
0x1a56   :  { %v2627_v59 = vmul.f32 0.015625, %v2625_v50  ;;  %v2622_v61 = vpop.xlane.xlu0 %2621  ;;  %v3886_v50 = vpack.c.bf16 %v2815_v49, %v2814_v48 }
0x1a57   :  { %v2626_v14 = vmul.f32 0.015625, %v2622_v61  ;;  %v2833_v61 = vld [vmem:[#allocation7 + $0x1a8] sm:$0xff] }
0x1a58   :  { %v2629_v58 = vsub.f32 %v2615_v46, %v2627_v59  ;;  %v2831_v46 = vld [vmem:[#allocation7 + $0x198] sm:$0xff]  ;;  %v2832_v59 = vld [vmem:[#allocation7 + $0x1a0] sm:$0xff] }
0x1a59   :  { %v2628_v6 = vsub.f32 %v2614_v47, %v2626_v14  ;;  %v3884_v47 = vpack.c.bf16 %v2831_v46, %v2830_v45  ;;  %v3888_v14 = vpack.c.bf16 %v2833_v61, %v2832_v59 }
0x1a5a   :  { %v2631_v4 = vmul.f32 %v2629_v58, %v2629_v58 }
0x1a5b   :  { %v2630_v63 = vmul.f32 %v2628_v6, %v2628_v6  ;;  %3885 = vmatprep.subr.bf16.mxu0 %v3884_v47 }
0x1a5c   :  { %v2635_v39 = vsel %vm140_vm0, %v2631_v4, 0.0  ;;  %3887 = vmatpush3.bf16.msra.mxu0 %v3886_v50  ;;  %v2835_v4 = vld [vmem:[#allocation7 + $0x1b8] sm:$0xff] }
0x1a5d   :  { %v2632_v56 = vsel %vm140_vm0, %v2630_v63, 0.0  ;;  %3889 = vmatprep.subr.bf16.mxu0 %v3888_v14 }
0x1a5e   :  { %2633 = vadd.xlane.f32.xlu0 %v2632_v56  ;;  %v2834_v56 = vld [vmem:[#allocation7 + $0x1b0] sm:$0xff] }
0x1a62   :  { %2636 = vadd.xlane.f32.xlu0 %v2635_v39  ;;  %v3892_v39 = vpack.c.bf16 %v2835_v4, %v2834_v56 }
0x1aeb   :  { %v2634_v24 = vpop.xlane.xlu0 %2633 }
0x1aec   :  { %v2638_v25 = vmul.f32 0.015625, %v2634_v24  ;;  %v2826_v24 = vld [vmem:[#allocation7 + $0x170] sm:$0xff] }
0x1aee   :  { %v2640_v26 = vadd.f32 1e-12, %v2638_v25  ;;  %v2827_v25 = vld [vmem:[#allocation7 + $0x178] sm:$0xff] }
0x1aef   :  { %v2637_v27 = vpop.xlane.xlu0 %2636 }
0x1af0   :  { %4121 = vrsqrt.f32 %v2640_v26  ;;  %v2639_v28 = vmul.f32 0.015625, %v2637_v27  ;;  %v3910_v26 = vpack.c.bf16 %v2827_v25, %v2826_v24  ;;  %v3270_v27 = vld [vmem:[%s5008_s11 + $0x2] sm:$0x3] }
0x1af2   :  { %v2641_v44 = vadd.f32 1e-12, %v2639_v28  ;;  %v2685_v28 = vrot.slane %v3270_v27, %v4502_v57 }
0x1af4   :  { %4123 = vrsqrt.f32 %v2641_v44  ;;  %v2689_v44 = vrot.slane %v3270_v27, %v4508_v60 }
0x1afa   :  { %v4122_v53 = vpop.eup %4121 }
0x1afb   :  { %v2644_v30 = vmul.f32 %v4122_v53, %v2628_v6  ;;  %v2817_v6 = vld [vmem:[#allocation7 + $0x128] sm:$0xff] }
0x1afd   :  { %v2652_v32 = vmul.f32 %v3252_v29, %v2644_v30 }
0x1afe   :  { %v4124_v34 = vpop.eup %4123 }
0x1aff   :  { %v4933_v35 = vadd.f32 %v3253_v31, %v2652_v32  ;;  %v2645_v9 = vmul.f32 %v4124_v34, %v2629_v58  ;;  %v2816_v58 = vld [vmem:[#allocation7 + $0x120] sm:$0xff] }
0x1b00   :  { %v3890_v63 = vpack.c.bf16 %v2817_v6, %v2816_v58 }
0x1b01   :  { %3271 = vmatmul.mubr.msk.f32.vlgmr.msra.gmra.mrb[20].mxu1 %vm140_vm0, %v4933_v35  ;;  %v2653_v7 = vmul.f32 %v3252_v29, %v2645_v9 }
0x1b02   :  { %2768 = vmatprep.mubr.f32.mxu1 %v4288_v33  ;;  %3891 = vmatpush3.bf16.msra.mxu0 %v3890_v63 }
0x1b03   :  { %v4938_v40 = vadd.f32 %v3253_v31, %v2653_v7  ;;  %3893 = vmatprep.subr.bf16.mxu0 %v3892_v39 }
0x1b05   :  { %3272 = vmatmul.mubr.msk.f32.gmra.mrb[22].mxu1 %vm140_vm0, %v4938_v40 }
0x1b06   :  { %3895 = vmatpush3.bf16.msra.mxu0 %v3894_v62  ;;  %3634 = vmatprep.mubr.msk.f32.mxu1 %vm4296_vm5, %v4288_v33 }
0x1b07   :  { %3897 = vmatprep.subr.bf16.mxu0 %v3896_v3 }
0x1b0a   :  { %3899 = vmatpush3.bf16.msra.mxu0 %v3898_v8 }
0x1b0b   :  { %3901 = vmatprep.subr.bf16.mxu0 %v3900_v15 }
0x1b0e   :  { %3903 = vmatpush3.bf16.msra.mxu0 %v3902_v18 }
0x1b0f   :  { %3905 = vmatprep.subr.bf16.mxu0 %v3904_v21 }
0x1b12   :  { %3907 = vmatpush3.bf16.msra.mxu0 %v3906_v23 }
0x1b13   :  { %3909 = vmatprep.subr.bf16.mxu0 %v3908_v10 }
0x1b16   :  { %3911 = vmatpush3.bf16.msra.mxu0 %v3910_v26 }
0x1bd4   :  { %v2764_v53 = vpop.f32.mrb[20].mxu1 }
0x1bd5   :  { %v2765_v29 = vadd.f32 %v2764_v53, %v2685_v28  ;;  %v2766_v30 = vpop.f32.mrb[21].mxu1 }
0x1bd6   :  { %v2767_v31 = vadd.f32 %v2766_v30, %v2689_v44 }
0x1bd7   :  { %v2775_v32 = vmul.f32 %v2765_v29, %v2765_v29 }
0x1bd8   :  { %v2776_v34 = vmul.f32 %v2767_v31, %v2767_v31  ;;  %v2770_v9 = vpop.f32.mrb[22].mxu1 }
0x1bd9   :  { %v2779_v7 = vmul.f32 %v2775_v32, %v2765_v29  ;;  %v2771_v41 = vadd.f32 %v2770_v9, %v2685_v28  ;;  %v2772_v1 = vpop.f32.mrb[23].mxu1  ;;  %v2981_v9 = vld [vmem:[#allocation8 + $0x8] sm:$0xff] }
0x1bda   :  { %v2780_v38 = vmul.f32 %v2776_v34, %v2767_v31  ;;  %v2773_v42 = vadd.f32 %v2772_v1, %v2689_v44  ;;  %v2980_v34 = vld [vmem:[#allocation8] sm:$0xff]  ;;  %v2983_v1 = vld [vmem:[#allocation8 + $0x18] sm:$0xff] }
0x1bdb   :  { %v2783_v43 = vmul.f32 0.044715, %v2779_v7  ;;  %v2777_v37 = vmul.f32 %v2771_v41, %v2771_v41  ;;  %v4295_v7 = vmov 0.0|0.0  }
0x1bdc   :  { %v2784_v45 = vmul.f32 0.044715, %v2780_v38  ;;  %v2778_v46 = vmul.f32 %v2773_v42, %v2773_v42  ;;  %3912 = vmatprep.subr.bf16.mxu1 %v4295_v7 }
0x1bdd   :  { %v2787_v47 = vadd.f32 %v2783_v43, %v2765_v29  ;;  %v2781_v57 = vmul.f32 %v2777_v37, %v2771_v41  ;;  %v2985_v43 = vld [vmem:[#allocation8 + $0x28] sm:$0xff] }
0x1bde   :  { %v2788_v48 = vadd.f32 %v2784_v45, %v2767_v31  ;;  %v2782_v60 = vmul.f32 %v2778_v46, %v2773_v42  ;;  %v2986_v45 = vld [vmem:[#allocation8 + $0x30] sm:$0xff]  ;;  %v2987_v46 = vld [vmem:[#allocation8 + $0x38] sm:$0xff] }
0x1bdf   :  { %v2791_v49 = vmul.f32 0.7978846, %v2787_v47  ;;  %v2785_v50 = vmul.f32 0.044715, %v2781_v57  ;;  %v3922_v47 = vpack.c.bf16 %v2987_v46, %v2986_v45 }
0x1be0   :  { %v2792_v59 = vmul.f32 0.7978846, %v2788_v48  ;;  %v2786_v61 = vmul.f32 0.044715, %v2782_v60 }
0x1be1   :  { %4125 = vtanh.f32 %v2791_v49  ;;  %v2789_v14 = vadd.f32 %v2785_v50, %v2771_v41 }
0x1be2   :  { %v2790_v58 = vadd.f32 %v2786_v61, %v2773_v42  ;;  %4127 = vtanh.f32 %v2792_v59 }
0x1be3   :  { %v2793_v6 = vmul.f32 0.7978846, %v2789_v14 }
0x1be4   :  { %v2794_v63 = vmul.f32 0.7978846, %v2790_v58 }
0x1be5   :  { %4129 = vtanh.f32 %v2793_v6  ;;  %v3277_v6 = vld [vmem:[%s5011_s14 + $0x1] ss:$0 sm:$0xff] }
0x1be6   :  { %4131 = vtanh.f32 %v2794_v63 }
0x1beb   :  { %v4126_v56 = vpop.eup %4125 }
0x1bec   :  { %v4128_v4 = vpop.eup %4127  ;;  %v2799_v39 = vadd.f32 1.0, %v4126_v56 }
0x1bed   :  { %v2800_v36 = vadd.f32 1.0, %v4128_v4 }
0x1bee   :  { %v2803_v0 = vmul.f32 0.5, %v2799_v39  ;;  %v3278_v39 = vld [vmem:[%s5012_s15 + $0x1] ss:$0 sm:$0xff] }
0x1bef   :  { %v4130_v62 = vpop.eup %4129  ;;  %v2804_v2 = vmul.f32 0.5, %v2800_v36  ;;  %v3069_v36 = vld [vmem:[#allocation10] sm:$0xff] }
0x1bf0   :  { %v4132_v55 = vpop.eup %4131  ;;  %v2801_v3 = vadd.f32 1.0, %v4130_v62  ;;  %v2807_v8 = vmul.f32 %v2803_v0, %v2765_v29  ;;  %v3070_v0 = vld [vmem:[#allocation10 + $0x8] sm:$0xff] }
0x1bf1   :  { %v2808_v52 = vmul.f32 %v2804_v2, %v2767_v31  ;;  %v2802_v5 = vadd.f32 1.0, %v4132_v55 }
0x1bf2   :  { %v2805_v11 = vmul.f32 0.5, %v2801_v3  ;;  %v3925_v3 = vpack.c.bf16 %v3070_v0, %v3069_v36 }
0x1bf3   :  { %2916 = vmatprep.mubr.f32.mxu0 %v2808_v52  ;;  %v2806_v12 = vmul.f32 0.5, %v2802_v5  ;;  %v3071_v52 = vld [vmem:[#allocation10 + $0x10] sm:$0xff]  ;;  %v3072_v5 = vld [vmem:[#allocation10 + $0x18] sm:$0xff] }
0x1bf4   :  { %2917 = vmatmul.mubr.f32.vlgmr.msra.gmra.mrb[32].mxu0 %v2807_v8  ;;  %v2809_v15 = vmul.f32 %v2805_v11, %v2771_v41  ;;  %v2982_v41 = vld [vmem:[#allocation8 + $0x10] sm:$0xff]  ;;  %v3928_v11 = vpack.c.bf16 %v3072_v5, %v3071_v52 }
0x1bf5   :  { %v2810_v13 = vmul.f32 %v2806_v12, %v2773_v42  ;;  %v3916_v38 = vpack.c.bf16 %v2983_v1, %v2982_v41  ;;  %v2984_v42 = vld [vmem:[#allocation8 + $0x20] sm:$0xff] }
0x1bf6   :  { %v3919_v37 = vpack.c.bf16 %v2985_v43, %v2984_v42  ;;  %v3073_v12 = vld [vmem:[#allocation10 + $0x20] sm:$0xff] }
0x1bf7   :  { %2921 = vmatprep.mubr.f32.mxu0 %v2810_v13  ;;  %v3074_v13 = vld [vmem:[#allocation10 + $0x28] sm:$0xff] }
0x1bf8   :  { %2922 = vmatmul.mubr.f32.gmra.mrb[34].mxu0 %v2809_v15  ;;  %v3931_v15 = vpack.c.bf16 %v3074_v13, %v3073_v12 }
0x1cc7   :  { %v3436_v17 = vpop.f32.mrb[32].mxu0 }
0x1cc8   :  { %v3437_v20 = vpop.f32.mrb[33].mxu0 }
0x1cc9   :  { %v3438_v18 = vadd.f32 %v3437_v20, %v3436_v17  ;;  %v3075_v17 = vld [vmem:[#allocation10 + $0x30] sm:$0xff] }
0x1ccb   :  { %v2919_v21 = vadd.f32 %v3438_v18, %v3274_v19  ;;  %v3439_v54 = vpop.f32.mrb[34].mxu0  ;;  %v3077_v18 = vld [vmem:[#allocation10 + $0x40] sm:$0xff] }
0x1ccc   :  { %v3440_v51 = vpop.f32.mrb[35].mxu0 }
0x1ccd   :  { %v3441_v16 = vadd.f32 %v3440_v51, %v3439_v54  ;;  %v2927_v22 = vadd.f32 %v2919_v21, %v4933_v35  ;;  %v3078_v21 = vld [vmem:[#allocation10 + $0x48] sm:$0xff]  ;;  %v3080_v51 = vld [vmem:[#allocation10 + $0x58] sm:$0xff] }
0x1cce   :  { %v3937_v54 = vpack.c.bf16 %v3078_v21, %v3077_v18 }
0x1ccf   :  { %v2924_v23 = vadd.f32 %v3441_v16, %v3274_v19  ;;  %v2933_v10 = vsel %vm140_vm0, %v2927_v22, 0.0  ;;  %v3076_v19 = vld [vmem:[#allocation10 + $0x38] sm:$0xff] }
0x1cd0   :  { %2934 = vadd.xlane.f32.xlu1 %v2933_v10  ;;  %v3934_v20 = vpack.c.bf16 %v3076_v19, %v3075_v17 }
0x1cd1   :  { %v2928_v24 = vadd.f32 %v2924_v23, %v4938_v40  ;;  %v3913_v40 = vpack.c.bf16 %v2981_v9, %v2980_v34  ;;  %v3082_v23 = vld [vmem:[#allocation10 + $0x68] sm:$0xff] }
0x1cd3   :  { %v2936_v25 = vsel %vm140_vm0, %v2928_v24, 0.0  ;;  %3914 = vmatpush3.bf16.msra.mxu1 %v3913_v40 }
0x1cd4   :  { %2937 = vadd.xlane.f32.xlu0 %v2936_v25  ;;  %3915 = vmatprep.subr.bf16.mxu1 %v4295_v7  ;;  %v3084_v25 = vld [vmem:[#allocation10 + $0x78] sm:$0xff] }
0x1cd7   :  { %3917 = vmatpush3.bf16.msra.mxu1 %v3916_v38 }
0x1cd8   :  { %3918 = vmatprep.subr.bf16.mxu1 %v4295_v7 }
0x1cdb   :  { %3920 = vmatpush3.bf16.msra.mxu1 %v3919_v37 }
0x1cdc   :  { %3921 = vmatprep.subr.bf16.mxu1 %v4295_v7 }
0x1cdf   :  { %3923 = vmatpush3.bf16.msra.mxu1 %v3922_v47 }
0x1ce0   :  { %3924 = vmatprep.subr.bf16.mxu1 %v4295_v7 }
0x1d5d   :  { %v2935_v26 = vpop.xlane.xlu1 %2934 }
0x1d5e   :  { %v2939_v27 = vmul.f32 0.015625, %v2935_v26 }
0x1d60   :  { %v2941_v28 = vsub.f32 %v2927_v22, %v2939_v27  ;;  %v3081_v22 = vld [vmem:[#allocation10 + $0x60] sm:$0xff] }
0x1d61   :  { %v2938_v44 = vpop.xlane.xlu0 %2937  ;;  %v3943_v10 = vpack.c.bf16 %v3082_v23, %v3081_v22  ;;  %v3279_v27 = vld [vmem:[%s5014_s17] ss:$0 sm:$0xff] }
0x1d62   :  { %v2940_v53 = vmul.f32 0.015625, %v2938_v44  ;;  %v2943_v29 = vmul.f32 %v2941_v28, %v2941_v28 }
0x1d64   :  { %v2942_v30 = vsub.f32 %v2928_v24, %v2940_v53  ;;  %v2945_v31 = vsel %vm140_vm0, %v2943_v29, 0.0  ;;  %v3083_v24 = vld [vmem:[#allocation10 + $0x70] sm:$0xff] }
0x1d65   :  { %2946 = vadd.xlane.f32.xlu1 %v2945_v31  ;;  %v3946_v26 = vpack.c.bf16 %v3084_v25, %v3083_v24 }
0x1d66   :  { %v2944_v35 = vmul.f32 %v2942_v30, %v2942_v30 }
0x1d68   :  { %v2948_v32 = vsel %vm140_vm0, %v2944_v35, 0.0 }
0x1d69   :  { %2949 = vadd.xlane.f32.xlu0 %v2948_v32 }
0x1df2   :  { %v2947_v57 = vpop.xlane.xlu1 %2946 }
0x1df3   :  { %v2951_v48 = vmul.f32 0.015625, %v2947_v57 }
0x1df5   :  { %v2953_v60 = vadd.f32 1e-12, %v2951_v48 }
0x1df6   :  { %v2950_v49 = vpop.xlane.xlu0 %2949 }
0x1df7   :  { %4133 = vrsqrt.f32 %v2953_v60  ;;  %v2952_v50 = vmul.f32 0.015625, %v2950_v49 }
0x1df9   :  { %v2954_v59 = vadd.f32 1e-12, %v2952_v50 }
0x1dfb   :  { %4135 = vrsqrt.f32 %v2954_v59 }
0x1e01   :  { %v4134_v61 = vpop.eup %4133 }
0x1e02   :  { %v2957_v14 = vmul.f32 %v4134_v61, %v2941_v28 }
0x1e04   :  { %v2965_v56 = vmul.f32 %v3277_v6, %v2957_v14 }
0x1e05   :  { %v4136_v58 = vpop.eup %4135 }
0x1e06   :  { %v2958_v63 = vmul.f32 %v4136_v58, %v2942_v30  ;;  %v2973_v2 = vadd.f32 %v3278_v39, %v2965_v56  ;;  %v3281_v30 = vld [vmem:[%s5016_s19] ss:$0 sm:$0xff] }
0x1e08   :  { %v2966_v4 = vmul.f32 %v3277_v6, %v2958_v63 }
0x1e0a   :  { %v2974_v62 = vadd.f32 %v3278_v39, %v2966_v4 }
0x1e0c   :  { %v2976_v55 = vrot.slane %v2974_v62, 7 }
0x1e0e   :  { %v2979_v8 = vsel %vm2978_vm6, %v2973_v2, %v2976_v55 }
0x1e0f   :  { %3635 = vmatmul.mubr.msk.f32.vlgmr.msra.gmra.mrb[24].mxu1 %vm140_vm0, %v2979_v8 }
0x1e10   :  { %3926 = vmatpush3.bf16.msra.mxu1 %v3925_v3  ;;  %3669 = vmatprep.mubr.msk.f32.mxu1 %vm4296_vm5, %v4288_v33  ;;  %v3079_v33 = vld [vmem:[#allocation10 + $0x50] sm:$0xff] }
0x1e11   :  { %3927 = vmatprep.subr.bf16.mxu1 %v4295_v7  ;;  %v3940_v16 = vpack.c.bf16 %v3080_v51, %v3079_v33 }
0x1e14   :  { %3929 = vmatpush3.bf16.msra.mxu1 %v3928_v11 }
0x1e15   :  { %3930 = vmatprep.subr.bf16.mxu1 %v4295_v7 }
0x1e18   :  { %3932 = vmatpush3.bf16.msra.mxu1 %v3931_v15 }
0x1e19   :  { %3933 = vmatprep.subr.bf16.mxu1 %v4295_v7 }
0x1e1c   :  { %3935 = vmatpush3.bf16.msra.mxu1 %v3934_v20 }
0x1e1d   :  { %3936 = vmatprep.subr.bf16.mxu1 %v4295_v7 }
0x1e20   :  { %3938 = vmatpush3.bf16.msra.mxu1 %v3937_v54 }
0x1e21   :  { %3939 = vmatprep.subr.bf16.mxu1 %v4295_v7 }
0x1e24   :  { %3941 = vmatpush3.bf16.msra.mxu1 %v3940_v16 }
0x1e25   :  { %3942 = vmatprep.subr.bf16.mxu1 %v4295_v7 }
0x1e28   :  { %3944 = vmatpush3.bf16.msra.mxu1 %v3943_v10 }
0x1e29   :  { %3945 = vmatprep.subr.bf16.mxu1 %v4295_v7 }
0x1e2c   :  { %3947 = vmatpush3.bf16.msra.mxu1 %v3946_v26 }
0x1ee2   :  { %v3064_v28 = vpop.f32.mrb[24].mxu1 }
0x1ee3   :  { %v3065_v44 = vadd.f32 %v3279_v27, %v3064_v28  ;;  %v3636_v53 = vpop.f32.mrb[25].mxu1 }
0x1ee5   :  { %v3068_v29 = vmax.f32 %v3065_v44, 0.0 }
0x1ee7   :  { %3670 = vmatmul.mubr.f32.vlgmr.msra.gmra.mrb[26].mxu1 %v3068_v29 }
0x1fba   :  { %v3158_v31 = vpop.f32.mrb[26].mxu1 }
0x1fbb   :  { %v3159_v35 = vadd.f32 %v3281_v30, %v3158_v31  ;;  %v3671_v32 = vpop.f32.mrb[27].mxu1 }
0x1fbd   :  { %3163 = vst.msk [vmem:[#allocation11] sm:$0x3] %vm3162_vm7, %v3159_v35 }
0x1fbe   :  { %4260 = shalt.err (!%p4257_p2)
}
0x1fbf   :  { %s5038_s25 = sld [smem:[#allocation21_spill]] }
0x1fc5   :  { %s4261_s3 = scalar_lea.hbm %s5038_s25, 32 }
0x1fc6   :  { %p4262_p3 = scmp.ne.s32.totalorder %s5038_s25, %s4261_s3  ;;  %p4265_p4 = scmp.lt.u32.totalorder %s4261_s3, %s5038_s25 }
0x1fc8   :  { %p4267_p5 = pnand %p4265_p4, %p4262_p3 }
0x1fca   :  { %4270 = shalt.err (!%p4267_p5)
}
0x1fcb   :  { %3173 = dma.vmem_to_hbm [thread:$0]  %s3171_s1, 32, %s5038_s25, [#allocation4]  }
0x1fcc   :  { %4277 = dma.done.wait [#allocation4], 32  }
0x1fcd   :  { %4278 = vsyncadd [#allocation4], 4294967264 }
0x1fce   :  { %3177 = vsyncpa [#allocation3], 1 }
0x1fcf   :  { %3178 = vsyncpa [#allocation6], 1 }
0x1fd0   :  { %3179 = vsyncpa [#allocation9], 1 }
0x1fd1   :  { %3180 = vsyncpa [#allocation4], 1 }

</bundles_post_ra>
